<compile_context>
chip_gen: v7x
topology: tpu7x:2x2x1
jax: 0.10.0
libtpu: 0.0.40
codegen_flags: <defaults>
</compile_context>

<pallas_src>
import functools

import jax
import jax.numpy as jnp
from jax.experimental import pallas as pl
from jax.experimental.pallas import tpu as pltpu


def _attention_core(qp, kp, vp, wp_ref, bp_ref, x_ref, attn_ref, ctx_ref,
                    *, b_blk, heads, nq, nk):
    """Shared attention core.

    qp: (b_blk*nq, C) f32, already scaled by Dh^-0.5 (bias included).
    kp, vp: (b_blk*nk, C) f32.
    Writes per-head contexts into the VMEM slab ctx_ref (b_blk*nq, C), then does one
    output projection into x_ref. Optionally stores softmax probs into attn_ref.
    """
    c = qp.shape[-1]
    dh = c // heads
    for b in range(b_blk):                      # static unroll: b_blk*heads tiny matmuls
        q_b = qp[b * nq:(b + 1) * nq]
        k_b = kp[b * nk:(b + 1) * nk]
        v_b = vp[b * nk:(b + 1) * nk]
        for h in range(heads):
            qh = q_b[:, h * dh:(h + 1) * dh]    # (nq, dh)
            kh = k_b[:, h * dh:(h + 1) * dh]    # (nk, dh)
            vh = v_b[:, h * dh:(h + 1) * dh]    # (nk, dh)

            s = jnp.einsum('qd,kd->qk', qh, kh,
                           preferred_element_type=jnp.float32)       # (nq, nk)
            m = jnp.max(s, axis=-1, keepdims=True)
            p = jnp.exp(s - m)
            inv = pl.reciprocal(jnp.sum(p, axis=-1, keepdims=True), approx=False)
            a = p * inv                                               # softmax
            # TODO(synk): attn_drop is identity (eval mode / p=0); a PRNG path would
            # use pltpu.prng_seed + pltpu.prng_random_bits.
            if attn_ref is not None:
                attn_ref[b * heads + h] = a.astype(attn_ref.dtype)

            ctx_ref[b * nq:(b + 1) * nq, h * dh:(h + 1) * dh] = jnp.dot(
                a, vh, preferred_element_type=jnp.float32)

    x = jnp.dot(ctx_ref[...], wp_ref[...],
                preferred_element_type=jnp.float32) + bp_ref[...]
    # TODO(synk): proj_drop is identity (eval mode / p=0).
    x_ref[...] = x.astype(x_ref.dtype)


def _attn_kernel_general(q_ref, k_ref, v_ref,
                         wq_ref, bq_ref, wk_ref, bk_ref, wv_ref, bv_ref,
                         wp_ref, bp_ref,
                         *out_and_scratch,
                         heads, scale, b_blk, nq, nk, return_attn):
    """General (cross-attention) path: q, k, v are distinct tensors."""
    if return_attn:
        x_ref, attn_ref, ctx_ref = out_and_scratch
    else:
        x_ref, ctx_ref = out_and_scratch
        attn_ref = None

    qp = (jnp.dot(q_ref[...], wq_ref[...], preferred_element_type=jnp.float32)
          + bq_ref[...]) * scale                        # scale applied once to q
    kp = jnp.dot(k_ref[...], wk_ref[...], preferred_element_type=jnp.float32) + bk_ref[...]
    vp = jnp.dot(v_ref[...], wv_ref[...], preferred_element_type=jnp.float32) + bv_ref[...]

    _attention_core(qp, kp, vp, wp_ref, bp_ref, x_ref, attn_ref, ctx_ref,
                    b_blk=b_blk, heads=heads, nq=nq, nk=nk)


def _attn_kernel_fused(x_in_ref, wqkv_ref, bqkv_ref, wp_ref, bp_ref,
                       *out_and_scratch,
                       heads, scale, b_blk, n, c, return_attn):
    """Self-attention fast path (q is k is v): one fused (rows, C) @ (C, 3C) projection."""
    if return_attn:
        x_ref, attn_ref, ctx_ref = out_and_scratch
    else:
        x_ref, ctx_ref = out_and_scratch
        attn_ref = None

    proj = jnp.dot(x_in_ref[...], wqkv_ref[...],
                   preferred_element_type=jnp.float32) + bqkv_ref[...]   # (rows, 3C)
    qp = proj[:, 0 * c:1 * c] * scale
    kp = proj[:, 1 * c:2 * c]
    vp = proj[:, 2 * c:3 * c]

    _attention_core(qp, kp, vp, wp_ref, bp_ref, x_ref, attn_ref, ctx_ref,
                    b_blk=b_blk, heads=heads, nq=n, nk=n)


def attention_forward(q, k, v, params, heads, *, return_attn=True, batch_blocks=1):
    """Fused multi-head attention.

    Returns (x: (B,Nq,C), attn: (B,heads,Nq,Nk)) if return_attn else x only.
    batch_blocks=1  -> single grid step, batch folded into matmul rows (best on 1-TC
                       v5e/v6e at these shapes).
    batch_blocks=B  -> per-batch 'parallel' grid (lets v7x's 2 TensorCores split work).
    """
    wq, bq, wk, bk, wv, bv, wp, bp = params            # weights stored as (in, out)
    B, Nq, C = q.shape
    Nk = k.shape[1]
    assert C % heads == 0
    assert B % batch_blocks == 0
    Dh = C // heads
    scale = float(Dh) ** -0.5
    b_blk = B // batch_blocks
    out_dtype = q.dtype

    self_attention = (q is k) and (k is v)

    q2 = q.reshape(B * Nq, C)
    bp2 = bp.reshape(1, C)

    # Advisory cost estimate for XLA's scheduler.
    itemsize = jnp.dtype(out_dtype).itemsize
    flops = B * (2 * Nq * C * C + 2 * Nk * C * C + 2 * Nk * C * C
                 + 4 * heads * Nq * Nk * Dh + 2 * Nq * C * C)
    transcendentals = B * heads * Nq * Nk
    bytes_accessed = itemsize * (q.size + k.size + v.size + 4 * C * C + 4 * C
                                 + B * Nq * C
                                 + (B * heads * Nq * Nk if return_attn else 0))
    cost = pl.CostEstimate(flops=flops, transcendentals=transcendentals,
                           bytes_accessed=bytes_accessed)

    w_spec = pl.BlockSpec((C, C), lambda i: (0, 0))        # VMEM-resident across steps
    b_spec = pl.BlockSpec((1, C), lambda i: (0, 0))
    x_out_spec = pl.BlockSpec((b_blk * Nq, C), lambda i: (i, 0))

    out_shape_x = jax.ShapeDtypeStruct((B * Nq, C), out_dtype)
    if return_attn:
        out_shape = (out_shape_x,
                     jax.ShapeDtypeStruct((B * heads, Nq, Nk), out_dtype))
        out_specs = [x_out_spec,
                     pl.BlockSpec((b_blk * heads, Nq, Nk), lambda i: (i, 0, 0))]
    else:
        out_shape = out_shape_x
        out_specs = x_out_spec

    scratch = [pltpu.VMEM((b_blk * Nq, C), jnp.float32)]   # per-head ctx slab

    cparams = pltpu.CompilerParams(
        dimension_semantics=("parallel",),
        vmem_limit_bytes=32 * 1024 * 1024,                 # explicit scoped-VMEM budget
    )

    if self_attention:
        wqkv = jnp.concatenate([wq, wk, wv], axis=1)                  # (C, 3C)
        bqkv = jnp.concatenate([bq, bk, bv]).reshape(1, 3 * C)        # (1, 3C)
        kernel = functools.partial(
            _attn_kernel_fused, heads=heads, scale=scale,
            b_blk=b_blk, n=Nq, c=C, return_attn=return_attn)
        in_specs = [
            pl.BlockSpec((b_blk * Nq, C), lambda i: (i, 0)),          # x (shared q/k/v)
            pl.BlockSpec((C, 3 * C), lambda i: (0, 0)),               # Wqkv
            pl.BlockSpec((1, 3 * C), lambda i: (0, 0)),               # bqkv
            w_spec, b_spec,                                           # Wproj, bproj
        ]
        args = (q2, wqkv, bqkv, wp, bp2)
    else:
        k2 = k.reshape(B * Nk, C)
        v2 = v.reshape(B * Nk, C)
        bq2, bk2, bv2 = bq.reshape(1, C), bk.reshape(1, C), bv.reshape(1, C)
        kernel = functools.partial(
            _attn_kernel_general, heads=heads, scale=scale,
            b_blk=b_blk, nq=Nq, nk=Nk, return_attn=return_attn)
        kv_in_spec = pl.BlockSpec((b_blk * Nk, C), lambda i: (i, 0))
        in_specs = [
            pl.BlockSpec((b_blk * Nq, C), lambda i: (i, 0)),          # q
            kv_in_spec, kv_in_spec,                                   # k, v
            w_spec, b_spec, w_spec, b_spec, w_spec, b_spec,           # Wq,bq,Wk,bk,Wv,bv
            w_spec, b_spec,                                           # Wproj, bproj
        ]
        args = (q2, k2, v2, wq, bq2, wk, bk2, wv, bv2, wp, bp2)

    result = pl.pallas_call(
        kernel,
        out_shape=out_shape,
        grid_spec=pltpu.PrefetchScalarGridSpec(
            num_scalar_prefetch=0,
            grid=(batch_blocks,),
            in_specs=in_specs,
            out_specs=out_specs,
            scratch_shapes=scratch,
        ),
        compiler_params=cparams,
        cost_estimate=cost,
    )(*args)

    if return_attn:
        x2d, attn_flat = result
        x = x2d.reshape(B, Nq, C)                       # metadata-only reshapes
        attn = attn_flat.reshape(B, heads, Nq, Nk)
        return x, attn
    return result.reshape(B, Nq, C)


def _ref_attention(q, k, v, params, heads):
    """Pure-JAX reference matching the PyTorch module (eval mode)."""
    wq, bq, wk, bk, wv, bv, wp, bp = params
    B, Nq, C = q.shape
    Dh = C // heads
    scale = Dh ** -0.5
    hp = jax.lax.Precision.HIGHEST

    qp = jnp.einsum('bnc,cd->bnd', q, wq, precision=hp) + bq
    kp = jnp.einsum('bnc,cd->bnd', k, wk, precision=hp) + bk
    vp = jnp.einsum('bnc,cd->bnd', v, wv, precision=hp) + bv

    def split(t):
        b_, n_, _ = t.shape
        return t.reshape(b_, n_, heads, Dh).transpose(0, 2, 1, 3)

    qh, kh, vh = split(qp), split(kp), split(vp)
    s = jnp.einsum('bhqd,bhkd->bhqk', qh, kh, precision=hp) * scale
    attn = jax.nn.softmax(s, axis=-1)
    ctx = jnp.einsum('bhqk,bhkd->bhqd', attn, vh, precision=hp)
    x = ctx.transpose(0, 2, 1, 3).reshape(B, Nq, C)
    x = jnp.einsum('bnc,cd->bnd', x, wp, precision=hp) + bp
    return x, attn


if __name__ == "__main__":
    # Small config consistent with the module: dim=32, heads=4 (Dh=8), seq=8, B=2.
    B, N, dim, heads = 2, 8, 32, 4

    key = jax.random.PRNGKey(0)
    ks = jax.random.split(key, 12)
    q = jax.random.normal(ks[0], (B, N, dim), dtype=jnp.float32)
    k = jax.random.normal(ks[1], (B, N, dim), dtype=jnp.float32)
    v = jax.random.normal(ks[2], (B, N, dim), dtype=jnp.float32)

    def init_linear(kw, kb):
        # PyTorch Linear weight is (out, in); we store the transpose (in, out).
        w = 0.2 * jax.random.normal(kw, (dim, dim), dtype=jnp.float32)
        b = 0.1 * jax.random.normal(kb, (dim,), dtype=jnp.float32)
        return w, b

    wq, bq = init_linear(ks[3], ks[4])
    wk, bk = init_linear(ks[5], ks[6])
    wv, bv = init_linear(ks[7], ks[8])
    wp, bp = init_linear(ks[9], ks[10])
    params = (wq, bq, wk, bk, wv, bv, wp, bp)

    x_ref, attn_ref = _ref_attention(q, k, v, params, heads)

    # 1) General (cross-attention) path: single fused grid step, batch folded into rows.
    x, attn = attention_forward(q, k, v, params, heads)
    x, attn = jax.block_until_ready((x, attn))
    assert x.shape == (B, N, dim), x.shape
    assert attn.shape == (B, heads, N, N), attn.shape
    assert jnp.allclose(x, x_ref, atol=1e-4, rtol=1e-4), \
        float(jnp.max(jnp.abs(x - x_ref)))
    assert jnp.allclose(attn, attn_ref, atol=1e-4, rtol=1e-4), \
        float(jnp.max(jnp.abs(attn - attn_ref)))

    # 2) Per-batch grid (v7x dual-TC style): same kernel, grid split over batch.
    x2, attn2 = attention_forward(q, k, v, params, heads, batch_blocks=B)
    x2, attn2 = jax.block_until_ready((x2, attn2))
    assert jnp.allclose(x2, x_ref, atol=1e-4, rtol=1e-4)
    assert jnp.allclose(attn2, attn_ref, atol=1e-4, rtol=1e-4)

    # 3) Self-attention fast path (q is k is v): fused (C, 3C) QKV projection.
    xs = jax.random.normal(ks[11], (B, N, dim), dtype=jnp.float32)
    xs_out, attn_s = attention_forward(xs, xs, xs, params, heads)
    xs_out, attn_s = jax.block_until_ready((xs_out, attn_s))
    xs_ref, attn_s_ref = _ref_attention(xs, xs, xs, params, heads)
    assert jnp.allclose(xs_out, xs_ref, atol=1e-4, rtol=1e-4), \
        float(jnp.max(jnp.abs(xs_out - xs_ref)))
    assert jnp.allclose(attn_s, attn_s_ref, atol=1e-4, rtol=1e-4)

    # 4) x-only path (skips attn stores / second output entirely).
    x_only = attention_forward(q, k, v, params, heads, return_attn=False)
    x_only = jax.block_until_ready(x_only)
    assert jnp.allclose(x_only, x_ref, atol=1e-4, rtol=1e-4)

    print("KERNEL_OK")
</pallas_src>

<mosaic_0001>
module attributes {stable_mosaic.version = 11 : i64} {
  func.func @_attn_kernel_general(%arg0: i32, %arg1: memref<16x32xf32, #tpu.memory_space<vmem>>, %arg2: memref<16x32xf32, #tpu.memory_space<vmem>>, %arg3: memref<16x32xf32, #tpu.memory_space<vmem>>, %arg4: memref<32x32xf32, #tpu.memory_space<vmem>>, %arg5: memref<1x32xf32, #tpu.memory_space<vmem>>, %arg6: memref<32x32xf32, #tpu.memory_space<vmem>>, %arg7: memref<1x32xf32, #tpu.memory_space<vmem>>, %arg8: memref<32x32xf32, #tpu.memory_space<vmem>>, %arg9: memref<1x32xf32, #tpu.memory_space<vmem>>, %arg10: memref<32x32xf32, #tpu.memory_space<vmem>>, %arg11: memref<1x32xf32, #tpu.memory_space<vmem>>, %arg12: memref<16x32xf32, #tpu.memory_space<vmem>>, %arg13: memref<8x8x8xf32, #tpu.memory_space<vmem>>, %arg14: memref<16x32xf32, #tpu.memory_space<vmem>>) attributes {dimension_semantics = [#tpu.dimension_semantics<parallel>], iteration_bounds = array<i64: 1>, scalar_prefetch = 0 : i64, scratch_operands = 1 : i64, tpu.core_type = #tpu.core_type<tc>, window_params = [{transform_indices = @transform_0, window_bounds = array<i64: 16, 32>}, {transform_indices = @transform_1, window_bounds = array<i64: 16, 32>}, {transform_indices = @transform_2, window_bounds = array<i64: 16, 32>}, {pipeline_mode = #tpu.pipeline_mode<synchronous>, transform_indices = @transform_3, window_bounds = array<i64: 32, 32>}, {pipeline_mode = #tpu.pipeline_mode<synchronous>, transform_indices = @transform_4, window_bounds = array<i64: 1, 32>}, {pipeline_mode = #tpu.pipeline_mode<synchronous>, transform_indices = @transform_5, window_bounds = array<i64: 32, 32>}, {pipeline_mode = #tpu.pipeline_mode<synchronous>, transform_indices = @transform_6, window_bounds = array<i64: 1, 32>}, {pipeline_mode = #tpu.pipeline_mode<synchronous>, transform_indices = @transform_7, window_bounds = array<i64: 32, 32>}, {pipeline_mode = #tpu.pipeline_mode<synchronous>, transform_indices = @transform_8, window_bounds = array<i64: 1, 32>}, {pipeline_mode = #tpu.pipeline_mode<synchronous>, transform_indices = @transform_9, window_bounds = array<i64: 32, 32>}, {pipeline_mode = #tpu.pipeline_mode<synchronous>, transform_indices = @transform_10, window_bounds = array<i64: 1, 32>}, {transform_indices = @transform_11, window_bounds = array<i64: 16, 32>}, {transform_indices = @transform_12, window_bounds = array<i64: 8, 8, 8>}]} {
    %c0 = arith.constant 0 : index
    %c0_0 = arith.constant 0 : index
    %0 = vector.load %arg1[%c0, %c0_0] : memref<16x32xf32, #tpu.memory_space<vmem>>, vector<16x32xf32>
    %c0_1 = arith.constant 0 : index
    %c0_2 = arith.constant 0 : index
    %1 = vector.load %arg4[%c0_1, %c0_2] : memref<32x32xf32, #tpu.memory_space<vmem>>, vector<32x32xf32>
    %cst = arith.constant dense<0.000000e+00> : vector<16x32xf32>
    %2 = tpu.matmul %0, %1, %cst {dimension_numbers = #tpu.dot_dimension_numbers<[1], [0], [0], [1], [0, 0, 1, 1], [], []>} : vector<16x32xf32>, vector<32x32xf32>, vector<16x32xf32> -> vector<16x32xf32>
    %c0_3 = arith.constant 0 : index
    %c0_4 = arith.constant 0 : index
    %3 = vector.load %arg5[%c0_3, %c0_4] : memref<1x32xf32, #tpu.memory_space<vmem>>, vector<1x32xf32>
    %4 = vector.broadcast %3 : vector<1x32xf32> to vector<16x32xf32>
    %5 = arith.addf %2, %4 : vector<16x32xf32>
    %cst_5 = arith.constant 0.353553385 : f32
    %6 = vector.broadcast %cst_5 : f32 to vector<16x32xf32>
    %7 = arith.mulf %5, %6 : vector<16x32xf32>
    %c0_6 = arith.constant 0 : index
    %c0_7 = arith.constant 0 : index
    %8 = vector.load %arg2[%c0_6, %c0_7] : memref<16x32xf32, #tpu.memory_space<vmem>>, vector<16x32xf32>
    %c0_8 = arith.constant 0 : index
    %c0_9 = arith.constant 0 : index
    %9 = vector.load %arg6[%c0_8, %c0_9] : memref<32x32xf32, #tpu.memory_space<vmem>>, vector<32x32xf32>
    %cst_10 = arith.constant dense<0.000000e+00> : vector<16x32xf32>
    %10 = tpu.matmul %8, %9, %cst_10 {dimension_numbers = #tpu.dot_dimension_numbers<[1], [0], [0], [1], [0, 0, 1, 1], [], []>} : vector<16x32xf32>, vector<32x32xf32>, vector<16x32xf32> -> vector<16x32xf32>
    %c0_11 = arith.constant 0 : index
    %c0_12 = arith.constant 0 : index
    %11 = vector.load %arg7[%c0_11, %c0_12] : memref<1x32xf32, #tpu.memory_space<vmem>>, vector<1x32xf32>
    %12 = vector.broadcast %11 : vector<1x32xf32> to vector<16x32xf32>
    %13 = arith.addf %10, %12 : vector<16x32xf32>
    %c0_13 = arith.constant 0 : index
    %c0_14 = arith.constant 0 : index
    %14 = vector.load %arg3[%c0_13, %c0_14] : memref<16x32xf32, #tpu.memory_space<vmem>>, vector<16x32xf32>
    %c0_15 = arith.constant 0 : index
    %c0_16 = arith.constant 0 : index
    %15 = vector.load %arg8[%c0_15, %c0_16] : memref<32x32xf32, #tpu.memory_space<vmem>>, vector<32x32xf32>
    %cst_17 = arith.constant dense<0.000000e+00> : vector<16x32xf32>
    %16 = tpu.matmul %14, %15, %cst_17 {dimension_numbers = #tpu.dot_dimension_numbers<[1], [0], [0], [1], [0, 0, 1, 1], [], []>} : vector<16x32xf32>, vector<32x32xf32>, vector<16x32xf32> -> vector<16x32xf32>
    %c0_18 = arith.constant 0 : index
    %c0_19 = arith.constant 0 : index
    %17 = vector.load %arg9[%c0_18, %c0_19] : memref<1x32xf32, #tpu.memory_space<vmem>>, vector<1x32xf32>
    %18 = vector.broadcast %17 : vector<1x32xf32> to vector<16x32xf32>
    %19 = arith.addf %16, %18 : vector<16x32xf32>
    %20 = vector.extract_strided_slice %7 {offsets = [0, 0], sizes = [8, 32], strides = [1, 1]} : vector<16x32xf32> to vector<8x32xf32>
    %21 = vector.extract_strided_slice %13 {offsets = [0, 0], sizes = [8, 32], strides = [1, 1]} : vector<16x32xf32> to vector<8x32xf32>
    %22 = vector.extract_strided_slice %19 {offsets = [0, 0], sizes = [8, 32], strides = [1, 1]} : vector<16x32xf32> to vector<8x32xf32>
    %23 = vector.extract_strided_slice %20 {offsets = [0, 0], sizes = [8, 8], strides = [1, 1]} : vector<8x32xf32> to vector<8x8xf32>
    %24 = vector.extract_strided_slice %21 {offsets = [0, 0], sizes = [8, 8], strides = [1, 1]} : vector<8x32xf32> to vector<8x8xf32>
    %25 = vector.extract_strided_slice %22 {offsets = [0, 0], sizes = [8, 8], strides = [1, 1]} : vector<8x32xf32> to vector<8x8xf32>
    "tpu.trace_start"() <{level = 10 : i32, message = "qd,kd->qk"}> : () -> ()
    %cst_20 = arith.constant dense<0.000000e+00> : vector<8x8xf32>
    %26 = tpu.matmul %23, %24, %cst_20 {dimension_numbers = #tpu.dot_dimension_numbers<[1], [1], [0], [0], [0, 0, 1, 0], [], []>} : vector<8x8xf32>, vector<8x8xf32>, vector<8x8xf32> -> vector<8x8xf32>
    "tpu.trace_stop"() : () -> ()
    %cst_21 = arith.constant dense<0xFF800000> : vector<8xf32>
    %27 = vector.multi_reduction <maximumf>, %26, %cst_21 [1] : vector<8x8xf32> to vector<8xf32>
    %28 = vector.shape_cast %27 : vector<8xf32> to vector<8x1xf32>
    %29 = vector.broadcast %28 : vector<8x1xf32> to vector<8x8xf32>
    %30 = arith.subf %26, %29 : vector<8x8xf32>
    %31 = math.exp %30 : vector<8x8xf32>
    %cst_22 = arith.constant dense<0.000000e+00> : vector<8xf32>
    %32 = vector.multi_reduction <add>, %31, %cst_22 [1] : vector<8x8xf32> to vector<8xf32>
    %33 = vector.shape_cast %32 : vector<8xf32> to vector<8x1xf32>
    %34 = tpu.reciprocal %33 : vector<8x1xf32> -> vector<8x1xf32>
    %35 = vector.broadcast %34 : vector<8x1xf32> to vector<8x8xf32>
    %36 = arith.mulf %31, %35 : vector<8x8xf32>
    %c0_23 = arith.constant 0 : index
    %c0_24 = arith.constant 0 : index
    %c0_25 = arith.constant 0 : index
    %37 = vector.load %arg13[%c0_23, %c0_24, %c0_25] : memref<8x8x8xf32, #tpu.memory_space<vmem>>, vector<1x8x8xf32>
    %38 = vector.shape_cast %37 : vector<1x8x8xf32> to vector<8x8xf32>
    %39 = vector.shape_cast %36 : vector<8x8xf32> to vector<1x8x8xf32>
    tpu.vector_store %arg13[%c0_23, %c0_24, %c0_25], %39 {strides = array<i32>} : memref<8x8x8xf32, #tpu.memory_space<vmem>>, vector<1x8x8xf32>,
    %cst_26 = arith.constant dense<0.000000e+00> : vector<8x8xf32>
    %40 = tpu.matmul %36, %25, %cst_26 {dimension_numbers = #tpu.dot_dimension_numbers<[1], [0], [0], [1], [0, 0, 1, 1], [], []>} : vector<8x8xf32>, vector<8x8xf32>, vector<8x8xf32> -> vector<8x8xf32>
    %c0_27 = arith.constant 0 : index
    %c0_28 = arith.constant 0 : index
    %41 = vector.load %arg14[%c0_27, %c0_28] : memref<16x32xf32, #tpu.memory_space<vmem>>, vector<8x8xf32>
    tpu.vector_store %arg14[%c0_27, %c0_28], %40 {strides = array<i32>} : memref<16x32xf32, #tpu.memory_space<vmem>>, vector<8x8xf32>,
    %42 = vector.extract_strided_slice %20 {offsets = [0, 8], sizes = [8, 8], strides = [1, 1]} : vector<8x32xf32> to vector<8x8xf32>
    %43 = vector.extract_strided_slice %21 {offsets = [0, 8], sizes = [8, 8], strides = [1, 1]} : vector<8x32xf32> to vector<8x8xf32>
    %44 = vector.extract_strided_slice %22 {offsets = [0, 8], sizes = [8, 8], strides = [1, 1]} : vector<8x32xf32> to vector<8x8xf32>
    "tpu.trace_start"() <{level = 10 : i32, message = "qd,kd->qk"}> : () -> ()
    %cst_29 = arith.constant dense<0.000000e+00> : vector<8x8xf32>
    %45 = tpu.matmul %42, %43, %cst_29 {dimension_numbers = #tpu.dot_dimension_numbers<[1], [1], [0], [0], [0, 0, 1, 0], [], []>} : vector<8x8xf32>, vector<8x8xf32>, vector<8x8xf32> -> vector<8x8xf32>
    "tpu.trace_stop"() : () -> ()
    %cst_30 = arith.constant dense<0xFF800000> : vector<8xf32>
    %46 = vector.multi_reduction <maximumf>, %45, %cst_30 [1] : vector<8x8xf32> to vector<8xf32>
    %47 = vector.shape_cast %46 : vector<8xf32> to vector<8x1xf32>
    %48 = vector.broadcast %47 : vector<8x1xf32> to vector<8x8xf32>
    %49 = arith.subf %45, %48 : vector<8x8xf32>
    %50 = math.exp %49 : vector<8x8xf32>
    %cst_31 = arith.constant dense<0.000000e+00> : vector<8xf32>
    %51 = vector.multi_reduction <add>, %50, %cst_31 [1] : vector<8x8xf32> to vector<8xf32>
    %52 = vector.shape_cast %51 : vector<8xf32> to vector<8x1xf32>
    %53 = tpu.reciprocal %52 : vector<8x1xf32> -> vector<8x1xf32>
    %54 = vector.broadcast %53 : vector<8x1xf32> to vector<8x8xf32>
    %55 = arith.mulf %50, %54 : vector<8x8xf32>
    %c1 = arith.constant 1 : index
    %c0_32 = arith.constant 0 : index
    %c0_33 = arith.constant 0 : index
    %56 = vector.load %arg13[%c1, %c0_32, %c0_33] : memref<8x8x8xf32, #tpu.memory_space<vmem>>, vector<1x8x8xf32>
    %57 = vector.shape_cast %56 : vector<1x8x8xf32> to vector<8x8xf32>
    %58 = vector.shape_cast %55 : vector<8x8xf32> to vector<1x8x8xf32>
    tpu.vector_store %arg13[%c1, %c0_32, %c0_33], %58 {strides = array<i32>} : memref<8x8x8xf32, #tpu.memory_space<vmem>>, vector<1x8x8xf32>,
    %cst_34 = arith.constant dense<0.000000e+00> : vector<8x8xf32>
    %59 = tpu.matmul %55, %44, %cst_34 {dimension_numbers = #tpu.dot_dimension_numbers<[1], [0], [0], [1], [0, 0, 1, 1], [], []>} : vector<8x8xf32>, vector<8x8xf32>, vector<8x8xf32> -> vector<8x8xf32>
    %c0_35 = arith.constant 0 : index
    %c8 = arith.constant 8 : index
    %60 = vector.load %arg14[%c0_35, %c8] : memref<16x32xf32, #tpu.memory_space<vmem>>, vector<8x8xf32>
    tpu.vector_store %arg14[%c0_35, %c8], %59 {strides = array<i32>} : memref<16x32xf32, #tpu.memory_space<vmem>>, vector<8x8xf32>,
    %61 = vector.extract_strided_slice %20 {offsets = [0, 16], sizes = [8, 8], strides = [1, 1]} : vector<8x32xf32> to vector<8x8xf32>
    %62 = vector.extract_strided_slice %21 {offsets = [0, 16], sizes = [8, 8], strides = [1, 1]} : vector<8x32xf32> to vector<8x8xf32>
    %63 = vector.extract_strided_slice %22 {offsets = [0, 16], sizes = [8, 8], strides = [1, 1]} : vector<8x32xf32> to vector<8x8xf32>
    "tpu.trace_start"() <{level = 10 : i32, message = "qd,kd->qk"}> : () -> ()
    %cst_36 = arith.constant dense<0.000000e+00> : vector<8x8xf32>
    %64 = tpu.matmul %61, %62, %cst_36 {dimension_numbers = #tpu.dot_dimension_numbers<[1], [1], [0], [0], [0, 0, 1, 0], [], []>} : vector<8x8xf32>, vector<8x8xf32>, vector<8x8xf32> -> vector<8x8xf32>
    "tpu.trace_stop"() : () -> ()
    %cst_37 = arith.constant dense<0xFF800000> : vector<8xf32>
    %65 = vector.multi_reduction <maximumf>, %64, %cst_37 [1] : vector<8x8xf32> to vector<8xf32>
    %66 = vector.shape_cast %65 : vector<8xf32> to vector<8x1xf32>
    %67 = vector.broadcast %66 : vector<8x1xf32> to vector<8x8xf32>
    %68 = arith.subf %64, %67 : vector<8x8xf32>
    %69 = math.exp %68 : vector<8x8xf32>
    %cst_38 = arith.constant dense<0.000000e+00> : vector<8xf32>
    %70 = vector.multi_reduction <add>, %69, %cst_38 [1] : vector<8x8xf32> to vector<8xf32>
    %71 = vector.shape_cast %70 : vector<8xf32> to vector<8x1xf32>
    %72 = tpu.reciprocal %71 : vector<8x1xf32> -> vector<8x1xf32>
    %73 = vector.broadcast %72 : vector<8x1xf32> to vector<8x8xf32>
    %74 = arith.mulf %69, %73 : vector<8x8xf32>
    %c2 = arith.constant 2 : index
    %c0_39 = arith.constant 0 : index
    %c0_40 = arith.constant 0 : index
    %75 = vector.load %arg13[%c2, %c0_39, %c0_40] : memref<8x8x8xf32, #tpu.memory_space<vmem>>, vector<1x8x8xf32>
    %76 = vector.shape_cast %75 : vector<1x8x8xf32> to vector<8x8xf32>
    %77 = vector.shape_cast %74 : vector<8x8xf32> to vector<1x8x8xf32>
    tpu.vector_store %arg13[%c2, %c0_39, %c0_40], %77 {strides = array<i32>} : memref<8x8x8xf32, #tpu.memory_space<vmem>>, vector<1x8x8xf32>,
    %cst_41 = arith.constant dense<0.000000e+00> : vector<8x8xf32>
    %78 = tpu.matmul %74, %63, %cst_41 {dimension_numbers = #tpu.dot_dimension_numbers<[1], [0], [0], [1], [0, 0, 1, 1], [], []>} : vector<8x8xf32>, vector<8x8xf32>, vector<8x8xf32> -> vector<8x8xf32>
    %c0_42 = arith.constant 0 : index
    %c16 = arith.constant 16 : index
    %79 = vector.load %arg14[%c0_42, %c16] : memref<16x32xf32, #tpu.memory_space<vmem>>, vector<8x8xf32>
    tpu.vector_store %arg14[%c0_42, %c16], %78 {strides = array<i32>} : memref<16x32xf32, #tpu.memory_space<vmem>>, vector<8x8xf32>,
    %80 = vector.extract_strided_slice %20 {offsets = [0, 24], sizes = [8, 8], strides = [1, 1]} : vector<8x32xf32> to vector<8x8xf32>
    %81 = vector.extract_strided_slice %21 {offsets = [0, 24], sizes = [8, 8], strides = [1, 1]} : vector<8x32xf32> to vector<8x8xf32>
    %82 = vector.extract_strided_slice %22 {offsets = [0, 24], sizes = [8, 8], strides = [1, 1]} : vector<8x32xf32> to vector<8x8xf32>
    "tpu.trace_start"() <{level = 10 : i32, message = "qd,kd->qk"}> : () -> ()
    %cst_43 = arith.constant dense<0.000000e+00> : vector<8x8xf32>
    %83 = tpu.matmul %80, %81, %cst_43 {dimension_numbers = #tpu.dot_dimension_numbers<[1], [1], [0], [0], [0, 0, 1, 0], [], []>} : vector<8x8xf32>, vector<8x8xf32>, vector<8x8xf32> -> vector<8x8xf32>
    "tpu.trace_stop"() : () -> ()
    %cst_44 = arith.constant dense<0xFF800000> : vector<8xf32>
    %84 = vector.multi_reduction <maximumf>, %83, %cst_44 [1] : vector<8x8xf32> to vector<8xf32>
    %85 = vector.shape_cast %84 : vector<8xf32> to vector<8x1xf32>
    %86 = vector.broadcast %85 : vector<8x1xf32> to vector<8x8xf32>
    %87 = arith.subf %83, %86 : vector<8x8xf32>
    %88 = math.exp %87 : vector<8x8xf32>
    %cst_45 = arith.constant dense<0.000000e+00> : vector<8xf32>
    %89 = vector.multi_reduction <add>, %88, %cst_45 [1] : vector<8x8xf32> to vector<8xf32>
    %90 = vector.shape_cast %89 : vector<8xf32> to vector<8x1xf32>
    %91 = tpu.reciprocal %90 : vector<8x1xf32> -> vector<8x1xf32>
    %92 = vector.broadcast %91 : vector<8x1xf32> to vector<8x8xf32>
    %93 = arith.mulf %88, %92 : vector<8x8xf32>
    %c3 = arith.constant 3 : index
    %c0_46 = arith.constant 0 : index
    %c0_47 = arith.constant 0 : index
    %94 = vector.load %arg13[%c3, %c0_46, %c0_47] : memref<8x8x8xf32, #tpu.memory_space<vmem>>, vector<1x8x8xf32>
    %95 = vector.shape_cast %94 : vector<1x8x8xf32> to vector<8x8xf32>
    %96 = vector.shape_cast %93 : vector<8x8xf32> to vector<1x8x8xf32>
    tpu.vector_store %arg13[%c3, %c0_46, %c0_47], %96 {strides = array<i32>} : memref<8x8x8xf32, #tpu.memory_space<vmem>>, vector<1x8x8xf32>,
    %cst_48 = arith.constant dense<0.000000e+00> : vector<8x8xf32>
    %97 = tpu.matmul %93, %82, %cst_48 {dimension_numbers = #tpu.dot_dimension_numbers<[1], [0], [0], [1], [0, 0, 1, 1], [], []>} : vector<8x8xf32>, vector<8x8xf32>, vector<8x8xf32> -> vector<8x8xf32>
    %c0_49 = arith.constant 0 : index
    %c24 = arith.constant 24 : index
    %98 = vector.load %arg14[%c0_49, %c24] : memref<16x32xf32, #tpu.memory_space<vmem>>, vector<8x8xf32>
    tpu.vector_store %arg14[%c0_49, %c24], %97 {strides = array<i32>} : memref<16x32xf32, #tpu.memory_space<vmem>>, vector<8x8xf32>,
    %99 = vector.extract_strided_slice %7 {offsets = [8, 0], sizes = [8, 32], strides = [1, 1]} : vector<16x32xf32> to vector<8x32xf32>
    %100 = vector.extract_strided_slice %13 {offsets = [8, 0], sizes = [8, 32], strides = [1, 1]} : vector<16x32xf32> to vector<8x32xf32>
    %101 = vector.extract_strided_slice %19 {offsets = [8, 0], sizes = [8, 32], strides = [1, 1]} : vector<16x32xf32> to vector<8x32xf32>
    %102 = vector.extract_strided_slice %99 {offsets = [0, 0], sizes = [8, 8], strides = [1, 1]} : vector<8x32xf32> to vector<8x8xf32>
    %103 = vector.extract_strided_slice %100 {offsets = [0, 0], sizes = [8, 8], strides = [1, 1]} : vector<8x32xf32> to vector<8x8xf32>
    %104 = vector.extract_strided_slice %101 {offsets = [0, 0], sizes = [8, 8], strides = [1, 1]} : vector<8x32xf32> to vector<8x8xf32>
    "tpu.trace_start"() <{level = 10 : i32, message = "qd,kd->qk"}> : () -> ()
    %cst_50 = arith.constant dense<0.000000e+00> : vector<8x8xf32>
    %105 = tpu.matmul %102, %103, %cst_50 {dimension_numbers = #tpu.dot_dimension_numbers<[1], [1], [0], [0], [0, 0, 1, 0], [], []>} : vector<8x8xf32>, vector<8x8xf32>, vector<8x8xf32> -> vector<8x8xf32>
    "tpu.trace_stop"() : () -> ()
    %cst_51 = arith.constant dense<0xFF800000> : vector<8xf32>
    %106 = vector.multi_reduction <maximumf>, %105, %cst_51 [1] : vector<8x8xf32> to vector<8xf32>
    %107 = vector.shape_cast %106 : vector<8xf32> to vector<8x1xf32>
    %108 = vector.broadcast %107 : vector<8x1xf32> to vector<8x8xf32>
    %109 = arith.subf %105, %108 : vector<8x8xf32>
    %110 = math.exp %109 : vector<8x8xf32>
    %cst_52 = arith.constant dense<0.000000e+00> : vector<8xf32>
    %111 = vector.multi_reduction <add>, %110, %cst_52 [1] : vector<8x8xf32> to vector<8xf32>
    %112 = vector.shape_cast %111 : vector<8xf32> to vector<8x1xf32>
    %113 = tpu.reciprocal %112 : vector<8x1xf32> -> vector<8x1xf32>
    %114 = vector.broadcast %113 : vector<8x1xf32> to vector<8x8xf32>
    %115 = arith.mulf %110, %114 : vector<8x8xf32>
    %c4 = arith.constant 4 : index
    %c0_53 = arith.constant 0 : index
    %c0_54 = arith.constant 0 : index
    %116 = vector.load %arg13[%c4, %c0_53, %c0_54] : memref<8x8x8xf32, #tpu.memory_space<vmem>>, vector<1x8x8xf32>
    %117 = vector.shape_cast %116 : vector<1x8x8xf32> to vector<8x8xf32>
    %118 = vector.shape_cast %115 : vector<8x8xf32> to vector<1x8x8xf32>
    tpu.vector_store %arg13[%c4, %c0_53, %c0_54], %118 {strides = array<i32>} : memref<8x8x8xf32, #tpu.memory_space<vmem>>, vector<1x8x8xf32>,
    %cst_55 = arith.constant dense<0.000000e+00> : vector<8x8xf32>
    %119 = tpu.matmul %115, %104, %cst_55 {dimension_numbers = #tpu.dot_dimension_numbers<[1], [0], [0], [1], [0, 0, 1, 1], [], []>} : vector<8x8xf32>, vector<8x8xf32>, vector<8x8xf32> -> vector<8x8xf32>
    %c8_56 = arith.constant 8 : index
    %c0_57 = arith.constant 0 : index
    %120 = vector.load %arg14[%c8_56, %c0_57] : memref<16x32xf32, #tpu.memory_space<vmem>>, vector<8x8xf32>
    tpu.vector_store %arg14[%c8_56, %c0_57], %119 {strides = array<i32>} : memref<16x32xf32, #tpu.memory_space<vmem>>, vector<8x8xf32>,
    %121 = vector.extract_strided_slice %99 {offsets = [0, 8], sizes = [8, 8], strides = [1, 1]} : vector<8x32xf32> to vector<8x8xf32>
    %122 = vector.extract_strided_slice %100 {offsets = [0, 8], sizes = [8, 8], strides = [1, 1]} : vector<8x32xf32> to vector<8x8xf32>
    %123 = vector.extract_strided_slice %101 {offsets = [0, 8], sizes = [8, 8], strides = [1, 1]} : vector<8x32xf32> to vector<8x8xf32>
    "tpu.trace_start"() <{level = 10 : i32, message = "qd,kd->qk"}> : () -> ()
    %cst_58 = arith.constant dense<0.000000e+00> : vector<8x8xf32>
    %124 = tpu.matmul %121, %122, %cst_58 {dimension_numbers = #tpu.dot_dimension_numbers<[1], [1], [0], [0], [0, 0, 1, 0], [], []>} : vector<8x8xf32>, vector<8x8xf32>, vector<8x8xf32> -> vector<8x8xf32>
    "tpu.trace_stop"() : () -> ()
    %cst_59 = arith.constant dense<0xFF800000> : vector<8xf32>
    %125 = vector.multi_reduction <maximumf>, %124, %cst_59 [1] : vector<8x8xf32> to vector<8xf32>
    %126 = vector.shape_cast %125 : vector<8xf32> to vector<8x1xf32>
    %127 = vector.broadcast %126 : vector<8x1xf32> to vector<8x8xf32>
    %128 = arith.subf %124, %127 : vector<8x8xf32>
    %129 = math.exp %128 : vector<8x8xf32>
    %cst_60 = arith.constant dense<0.000000e+00> : vector<8xf32>
    %130 = vector.multi_reduction <add>, %129, %cst_60 [1] : vector<8x8xf32> to vector<8xf32>
    %131 = vector.shape_cast %130 : vector<8xf32> to vector<8x1xf32>
    %132 = tpu.reciprocal %131 : vector<8x1xf32> -> vector<8x1xf32>
    %133 = vector.broadcast %132 : vector<8x1xf32> to vector<8x8xf32>
    %134 = arith.mulf %129, %133 : vector<8x8xf32>
    %c5 = arith.constant 5 : index
    %c0_61 = arith.constant 0 : index
    %c0_62 = arith.constant 0 : index
    %135 = vector.load %arg13[%c5, %c0_61, %c0_62] : memref<8x8x8xf32, #tpu.memory_space<vmem>>, vector<1x8x8xf32>
    %136 = vector.shape_cast %135 : vector<1x8x8xf32> to vector<8x8xf32>
    %137 = vector.shape_cast %134 : vector<8x8xf32> to vector<1x8x8xf32>
    tpu.vector_store %arg13[%c5, %c0_61, %c0_62], %137 {strides = array<i32>} : memref<8x8x8xf32, #tpu.memory_space<vmem>>, vector<1x8x8xf32>,
    %cst_63 = arith.constant dense<0.000000e+00> : vector<8x8xf32>
    %138 = tpu.matmul %134, %123, %cst_63 {dimension_numbers = #tpu.dot_dimension_numbers<[1], [0], [0], [1], [0, 0, 1, 1], [], []>} : vector<8x8xf32>, vector<8x8xf32>, vector<8x8xf32> -> vector<8x8xf32>
    %c8_64 = arith.constant 8 : index
    %c8_65 = arith.constant 8 : index
    %139 = vector.load %arg14[%c8_64, %c8_65] : memref<16x32xf32, #tpu.memory_space<vmem>>, vector<8x8xf32>
    tpu.vector_store %arg14[%c8_64, %c8_65], %138 {strides = array<i32>} : memref<16x32xf32, #tpu.memory_space<vmem>>, vector<8x8xf32>,
    %140 = vector.extract_strided_slice %99 {offsets = [0, 16], sizes = [8, 8], strides = [1, 1]} : vector<8x32xf32> to vector<8x8xf32>
    %141 = vector.extract_strided_slice %100 {offsets = [0, 16], sizes = [8, 8], strides = [1, 1]} : vector<8x32xf32> to vector<8x8xf32>
    %142 = vector.extract_strided_slice %101 {offsets = [0, 16], sizes = [8, 8], strides = [1, 1]} : vector<8x32xf32> to vector<8x8xf32>
    "tpu.trace_start"() <{level = 10 : i32, message = "qd,kd->qk"}> : () -> ()
    %cst_66 = arith.constant dense<0.000000e+00> : vector<8x8xf32>
    %143 = tpu.matmul %140, %141, %cst_66 {dimension_numbers = #tpu.dot_dimension_numbers<[1], [1], [0], [0], [0, 0, 1, 0], [], []>} : vector<8x8xf32>, vector<8x8xf32>, vector<8x8xf32> -> vector<8x8xf32>
    "tpu.trace_stop"() : () -> ()
    %cst_67 = arith.constant dense<0xFF800000> : vector<8xf32>
    %144 = vector.multi_reduction <maximumf>, %143, %cst_67 [1] : vector<8x8xf32> to vector<8xf32>
    %145 = vector.shape_cast %144 : vector<8xf32> to vector<8x1xf32>
    %146 = vector.broadcast %145 : vector<8x1xf32> to vector<8x8xf32>
    %147 = arith.subf %143, %146 : vector<8x8xf32>
    %148 = math.exp %147 : vector<8x8xf32>
    %cst_68 = arith.constant dense<0.000000e+00> : vector<8xf32>
    %149 = vector.multi_reduction <add>, %148, %cst_68 [1] : vector<8x8xf32> to vector<8xf32>
    %150 = vector.shape_cast %149 : vector<8xf32> to vector<8x1xf32>
    %151 = tpu.reciprocal %150 : vector<8x1xf32> -> vector<8x1xf32>
    %152 = vector.broadcast %151 : vector<8x1xf32> to vector<8x8xf32>
    %153 = arith.mulf %148, %152 : vector<8x8xf32>
    %c6 = arith.constant 6 : index
    %c0_69 = arith.constant 0 : index
    %c0_70 = arith.constant 0 : index
    %154 = vector.load %arg13[%c6, %c0_69, %c0_70] : memref<8x8x8xf32, #tpu.memory_space<vmem>>, vector<1x8x8xf32>
    %155 = vector.shape_cast %154 : vector<1x8x8xf32> to vector<8x8xf32>
    %156 = vector.shape_cast %153 : vector<8x8xf32> to vector<1x8x8xf32>
    tpu.vector_store %arg13[%c6, %c0_69, %c0_70], %156 {strides = array<i32>} : memref<8x8x8xf32, #tpu.memory_space<vmem>>, vector<1x8x8xf32>,
    %cst_71 = arith.constant dense<0.000000e+00> : vector<8x8xf32>
    %157 = tpu.matmul %153, %142, %cst_71 {dimension_numbers = #tpu.dot_dimension_numbers<[1], [0], [0], [1], [0, 0, 1, 1], [], []>} : vector<8x8xf32>, vector<8x8xf32>, vector<8x8xf32> -> vector<8x8xf32>
    %c8_72 = arith.constant 8 : index
    %c16_73 = arith.constant 16 : index
    %158 = vector.load %arg14[%c8_72, %c16_73] : memref<16x32xf32, #tpu.memory_space<vmem>>, vector<8x8xf32>
    tpu.vector_store %arg14[%c8_72, %c16_73], %157 {strides = array<i32>} : memref<16x32xf32, #tpu.memory_space<vmem>>, vector<8x8xf32>,
    %159 = vector.extract_strided_slice %99 {offsets = [0, 24], sizes = [8, 8], strides = [1, 1]} : vector<8x32xf32> to vector<8x8xf32>
    %160 = vector.extract_strided_slice %100 {offsets = [0, 24], sizes = [8, 8], strides = [1, 1]} : vector<8x32xf32> to vector<8x8xf32>
    %161 = vector.extract_strided_slice %101 {offsets = [0, 24], sizes = [8, 8], strides = [1, 1]} : vector<8x32xf32> to vector<8x8xf32>
    "tpu.trace_start"() <{level = 10 : i32, message = "qd,kd->qk"}> : () -> ()
    %cst_74 = arith.constant dense<0.000000e+00> : vector<8x8xf32>
    %162 = tpu.matmul %159, %160, %cst_74 {dimension_numbers = #tpu.dot_dimension_numbers<[1], [1], [0], [0], [0, 0, 1, 0], [], []>} : vector<8x8xf32>, vector<8x8xf32>, vector<8x8xf32> -> vector<8x8xf32>
    "tpu.trace_stop"() : () -> ()
    %cst_75 = arith.constant dense<0xFF800000> : vector<8xf32>
    %163 = vector.multi_reduction <maximumf>, %162, %cst_75 [1] : vector<8x8xf32> to vector<8xf32>
    %164 = vector.shape_cast %163 : vector<8xf32> to vector<8x1xf32>
    %165 = vector.broadcast %164 : vector<8x1xf32> to vector<8x8xf32>
    %166 = arith.subf %162, %165 : vector<8x8xf32>
    %167 = math.exp %166 : vector<8x8xf32>
    %cst_76 = arith.constant dense<0.000000e+00> : vector<8xf32>
    %168 = vector.multi_reduction <add>, %167, %cst_76 [1] : vector<8x8xf32> to vector<8xf32>
    %169 = vector.shape_cast %168 : vector<8xf32> to vector<8x1xf32>
    %170 = tpu.reciprocal %169 : vector<8x1xf32> -> vector<8x1xf32>
    %171 = vector.broadcast %170 : vector<8x1xf32> to vector<8x8xf32>
    %172 = arith.mulf %167, %171 : vector<8x8xf32>
    %c7 = arith.constant 7 : index
    %c0_77 = arith.constant 0 : index
    %c0_78 = arith.constant 0 : index
    %173 = vector.load %arg13[%c7, %c0_77, %c0_78] : memref<8x8x8xf32, #tpu.memory_space<vmem>>, vector<1x8x8xf32>
    %174 = vector.shape_cast %173 : vector<1x8x8xf32> to vector<8x8xf32>
    %175 = vector.shape_cast %172 : vector<8x8xf32> to vector<1x8x8xf32>
    tpu.vector_store %arg13[%c7, %c0_77, %c0_78], %175 {strides = array<i32>} : memref<8x8x8xf32, #tpu.memory_space<vmem>>, vector<1x8x8xf32>,
    %cst_79 = arith.constant dense<0.000000e+00> : vector<8x8xf32>
    %176 = tpu.matmul %172, %161, %cst_79 {dimension_numbers = #tpu.dot_dimension_numbers<[1], [0], [0], [1], [0, 0, 1, 1], [], []>} : vector<8x8xf32>, vector<8x8xf32>, vector<8x8xf32> -> vector<8x8xf32>
    %c8_80 = arith.constant 8 : index
    %c24_81 = arith.constant 24 : index
    %177 = vector.load %arg14[%c8_80, %c24_81] : memref<16x32xf32, #tpu.memory_space<vmem>>, vector<8x8xf32>
    tpu.vector_store %arg14[%c8_80, %c24_81], %176 {strides = array<i32>} : memref<16x32xf32, #tpu.memory_space<vmem>>, vector<8x8xf32>,
    %c0_82 = arith.constant 0 : index
    %c0_83 = arith.constant 0 : index
    %178 = vector.load %arg14[%c0_82, %c0_83] : memref<16x32xf32, #tpu.memory_space<vmem>>, vector<16x32xf32>
    %c0_84 = arith.constant 0 : index
    %c0_85 = arith.constant 0 : index
    %179 = vector.load %arg10[%c0_84, %c0_85] : memref<32x32xf32, #tpu.memory_space<vmem>>, vector<32x32xf32>
    %cst_86 = arith.constant dense<0.000000e+00> : vector<16x32xf32>
    %180 = tpu.matmul %178, %179, %cst_86 {dimension_numbers = #tpu.dot_dimension_numbers<[1], [0], [0], [1], [0, 0, 1, 1], [], []>} : vector<16x32xf32>, vector<32x32xf32>, vector<16x32xf32> -> vector<16x32xf32>
    %c0_87 = arith.constant 0 : index
    %c0_88 = arith.constant 0 : index
    %181 = vector.load %arg11[%c0_87, %c0_88] : memref<1x32xf32, #tpu.memory_space<vmem>>, vector<1x32xf32>
    %182 = vector.broadcast %181 : vector<1x32xf32> to vector<16x32xf32>
    %183 = arith.addf %180, %182 : vector<16x32xf32>
    %c0_89 = arith.constant 0 : index
    %c0_90 = arith.constant 0 : index
    %184 = vector.load %arg12[%c0_89, %c0_90] : memref<16x32xf32, #tpu.memory_space<vmem>>, vector<16x32xf32>
    tpu.vector_store %arg12[%c0_89, %c0_90], %183 {strides = array<i32>} : memref<16x32xf32, #tpu.memory_space<vmem>>, vector<16x32xf32>,
    return
  }
  func.func @transform_0(%arg0: i32) -> (i32, i32) {
    %c0_i32 = arith.constant 0 : i32
    %c0_i32_0 = arith.constant 0 : i32
    return %arg0, %c0_i32 : i32, i32
  }
  func.func @transform_1(%arg0: i32) -> (i32, i32) {
    %c0_i32 = arith.constant 0 : i32
    %c0_i32_0 = arith.constant 0 : i32
    return %arg0, %c0_i32 : i32, i32
  }
  func.func @transform_2(%arg0: i32) -> (i32, i32) {
    %c0_i32 = arith.constant 0 : i32
    %c0_i32_0 = arith.constant 0 : i32
    return %arg0, %c0_i32 : i32, i32
  }
  func.func @transform_3(%arg0: i32) -> (i32, i32) {
    %c0_i32 = arith.constant 0 : i32
    %c0_i32_0 = arith.constant 0 : i32
    %c0_i32_1 = arith.constant 0 : i32
    return %c0_i32, %c0_i32_0 : i32, i32
  }
  func.func @transform_4(%arg0: i32) -> (i32, i32) {
    %c0_i32 = arith.constant 0 : i32
    %c0_i32_0 = arith.constant 0 : i32
    %c0_i32_1 = arith.constant 0 : i32
    return %c0_i32, %c0_i32_0 : i32, i32
  }
  func.func @transform_5(%arg0: i32) -> (i32, i32) {
    %c0_i32 = arith.constant 0 : i32
    %c0_i32_0 = arith.constant 0 : i32
    %c0_i32_1 = arith.constant 0 : i32
    return %c0_i32, %c0_i32_0 : i32, i32
  }
  func.func @transform_6(%arg0: i32) -> (i32, i32) {
    %c0_i32 = arith.constant 0 : i32
    %c0_i32_0 = arith.constant 0 : i32
    %c0_i32_1 = arith.constant 0 : i32
    return %c0_i32, %c0_i32_0 : i32, i32
  }
  func.func @transform_7(%arg0: i32) -> (i32, i32) {
    %c0_i32 = arith.constant 0 : i32
    %c0_i32_0 = arith.constant 0 : i32
    %c0_i32_1 = arith.constant 0 : i32
    return %c0_i32, %c0_i32_0 : i32, i32
  }
  func.func @transform_8(%arg0: i32) -> (i32, i32) {
    %c0_i32 = arith.constant 0 : i32
    %c0_i32_0 = arith.constant 0 : i32
    %c0_i32_1 = arith.constant 0 : i32
    return %c0_i32, %c0_i32_0 : i32, i32
  }
  func.func @transform_9(%arg0: i32) -> (i32, i32) {
    %c0_i32 = arith.constant 0 : i32
    %c0_i32_0 = arith.constant 0 : i32
    %c0_i32_1 = arith.constant 0 : i32
    return %c0_i32, %c0_i32_0 : i32, i32
  }
  func.func @transform_10(%arg0: i32) -> (i32, i32) {
    %c0_i32 = arith.constant 0 : i32
    %c0_i32_0 = arith.constant 0 : i32
    %c0_i32_1 = arith.constant 0 : i32
    return %c0_i32, %c0_i32_0 : i32, i32
  }
  func.func @transform_11(%arg0: i32) -> (i32, i32) {
    %c0_i32 = arith.constant 0 : i32
    %c0_i32_0 = arith.constant 0 : i32
    return %arg0, %c0_i32 : i32, i32
  }
  func.func @transform_12(%arg0: i32) -> (i32, i32, i32) {
    %c0_i32 = arith.constant 0 : i32
    %c0_i32_0 = arith.constant 0 : i32
    %c0_i32_1 = arith.constant 0 : i32
    return %arg0, %c0_i32, %c0_i32_0 : i32, i32, i32
  }
}

</mosaic_0001>

<bundles_post_ra>
// kernel: tpu_custom_call.1
= control target key start
LH: loop header
LB: loop body
LE: loop exit
PB: predicated region body
PF: predicated region fallthrough
CT: control target
= control target key end

     0   :  { %18 = vsyncpa [#allocation4], 0  ;;  %s2830_s0 = inlined_call_operand.hbm [shape: f32[16,32], index: 0, kind: input, shape index: {}]   ;;  %s2831_s1 = inlined_call_operand.hbm [shape: f32[16,32], index: 1, kind: input, shape index: {}]   ;;  %s2832_s2 = inlined_call_operand.hbm [shape: f32[16,32], index: 2, kind: input, shape index: {}]   ;;  %s2833_s3 = inlined_call_operand.hbm [shape: f32[32,32], index: 3, kind: input, shape index: {}]   ;;  %s2834_s4 = inlined_call_operand.vmem [shape: f32[1,32], index: 4, kind: input, shape index: {}]   ;;  %s2835_s5 = inlined_call_operand.hbm [shape: f32[32,32], index: 5, kind: input, shape index: {}]   ;;  %s2836_s6 = inlined_call_operand.vmem [shape: f32[1,32], index: 6, kind: input, shape index: {}]   ;;  %s2837_s7 = inlined_call_operand.hbm [shape: f32[32,32], index: 7, kind: input, shape index: {}]   ;;  %s2838_s8 = inlined_call_operand.hbm [shape: f32[1,32], index: 8, kind: input, shape index: {}]   ;;  %s2839_s9 = inlined_call_operand.vmem [shape: f32[32,32], index: 9, kind: input, shape index: {}]   ;;  %s2840_s10 = inlined_call_operand.vmem [shape: f32[1,32], index: 10, kind: input, shape index: {}]   ;;  %s2841_s11 = inlined_call_operand.hbm [shape: f32[16,32], index: 11, kind: output, shape index: {0}]   ;;  %s2842_s12 = inlined_call_operand.hbm [shape: f32[8,8,8], index: 12, kind: output, shape index: {1}]  }
   0x1   :  { %19 = vsyncpa [#allocation7], 0 }
   0x2   :  { %20 = vsyncpa [#allocation10], 0 }
   0x3   :  { %21 = vsyncpa [#allocation13], 0 }
   0x4   :  { %22 = vsyncpa [#allocation5], 0 }
   0x5   :  { %23 = vsyncpa [#allocation17], 0  ;;  %s2423_s21 = smov [#allocation6]   ;;  %s2424_s23 = smov [#allocation9]  }
   0x6   :  { %s41_s22 = sshll.u32 %s2423_s21, 4  ;;  %s65_s24 = sshll.u32 %s2424_s23, 4  ;;  %s42_s22 = int_to_ptr.vmem [resolvable:$true] %s41_s22  ;;  %s2506_s24 = int_to_ptr.vmem [resolvable:$true] %s65_s24 }
   0x7   :  { %s2213_s27 = scalar_lea.hbm %s2831_s1, 256 }
   0x8   :  { %p2214_p0 = scmp.ne.s32.totalorder %s2831_s1, %s2213_s27  ;;  %p2217_p1 = scmp.lt.u32.totalorder %s2213_s27, %s2831_s1 }
   0xa   :  { %p2219_p2 = pnand %p2217_p1, %p2214_p0 }
   0xc   :  { %2222 = shalt.err (!%p2219_p2)
}
   0xd   :  { %s2223_s14 = scalar_lea.vmem %s42_s22, 256  ;;  %p2228_p4 = scmp.lt.s32.totalorder %s42_s22, %s42_s22 }
   0xe   :  { %p2224_p3 = scmp.ne.s32.totalorder %s42_s22, %s2223_s14  ;;  %p2229_p5 = scmp.lt.s32.totalorder %s2223_s14, %s2223_s14 }
  0x10   :  { %p2230_p6 = por %p2229_p5, %p2228_p4 }
  0x12   :  { %p2231_p7 = pnand %p2230_p6, %p2224_p3 }
  0x14   :  { %2234 = shalt.err (!%p2231_p7)
}
  0x15   :  { %s2425_s15 = smov 128   ;;  %s2426_s16 = smov 8  }
  0x16   :  { %47 = dma.hbm_to_vmem [thread:$0]  %s2831_s1, 256, %s42_s22, [#allocation7], %s2425_s15, %s2425_s15, %s2426_s16  }
  0x17   :  { %s2235_s21 = scalar_lea.hbm %s2833_s3, 512 }
  0x18   :  { %p2236_p8 = scmp.ne.s32.totalorder %s2833_s3, %s2235_s21  ;;  %p2239_p9 = scmp.lt.u32.totalorder %s2235_s21, %s2833_s3 }
  0x1a   :  { %p2241_p10 = pnand %p2239_p9, %p2236_p8 }
  0x1c   :  { %2244 = shalt.err (!%p2241_p10)
}
  0x1d   :  { %s2245_s28 = scalar_lea.vmem %s2506_s24, 512  ;;  %p2250_p12 = scmp.lt.s32.totalorder %s2506_s24, %s2506_s24 }
  0x1e   :  { %p2246_p11 = scmp.ne.s32.totalorder %s2506_s24, %s2245_s28  ;;  %p2251_p13 = scmp.lt.s32.totalorder %s2245_s28, %s2245_s28 }
  0x20   :  { %p2252_p0 = por %p2251_p13, %p2250_p12 }
  0x22   :  { %p2253_p1 = pnand %p2252_p0, %p2246_p11 }
  0x24   :  { %2256 = shalt.err (!%p2253_p1)
}
  0x25   :  { %71 = dma.hbm_to_vmem [thread:$0]  %s2833_s3, 512, %s2506_s24, [#allocation10], %s2425_s15, %s2425_s15, %s2426_s16  }
  0x26   :  { %s2427_s29 = smov [#allocation12]   ;;  %s2428_s13 = smov [#allocation3]  }
  0x27   :  { %s93_s30 = sshll.u32 %s2427_s29, 4  ;;  %s29_s14 = sshll.u32 %s2428_s13, 4  ;;  %s94_s30 = int_to_ptr.vmem [resolvable:$true] %s93_s30  ;;  %s2543_s14 = int_to_ptr.vmem [resolvable:$true] %s29_s14 }
  0x28   :  { %s2257_s19 = scalar_lea.hbm %s2837_s7, 512 }
  0x29   :  { %p2258_p2 = scmp.ne.s32.totalorder %s2837_s7, %s2257_s19  ;;  %p2261_p3 = scmp.lt.u32.totalorder %s2257_s19, %s2837_s7 }
  0x2b   :  { %p2263_p4 = pnand %p2261_p3, %p2258_p2 }
  0x2d   :  { %2266 = shalt.err (!%p2263_p4)
}
  0x2e   :  { %s2267_s3 = scalar_lea.vmem %s94_s30, 512  ;;  %p2272_p6 = scmp.lt.s32.totalorder %s94_s30, %s94_s30 }
  0x2f   :  { %p2268_p5 = scmp.ne.s32.totalorder %s94_s30, %s2267_s3  ;;  %p2273_p7 = scmp.lt.s32.totalorder %s2267_s3, %s2267_s3 }
  0x31   :  { %p2274_p8 = por %p2273_p7, %p2272_p6 }
  0x33   :  { %p2275_p9 = pnand %p2274_p8, %p2268_p5 }
  0x35   :  { %2278 = shalt.err (!%p2275_p9)
}
  0x36   :  { %99 = dma.hbm_to_vmem [thread:$0]  %s2837_s7, 512, %s94_s30, [#allocation13], %s2425_s15, %s2425_s15, %s2426_s16  }
  0x37   :  { %s2279_s1 = scalar_lea.hbm %s2830_s0, 256 }
  0x38   :  { %p2280_p10 = scmp.ne.s32.totalorder %s2830_s0, %s2279_s1  ;;  %p2283_p11 = scmp.lt.u32.totalorder %s2279_s1, %s2830_s0 }
  0x3a   :  { %p2285_p12 = pnand %p2283_p11, %p2280_p10 }
  0x3c   :  { %2288 = shalt.err (!%p2285_p12)
}
  0x3d   :  { %s2289_s18 = scalar_lea.vmem %s2543_s14, 256  ;;  %p2294_p0 = scmp.lt.s32.totalorder %s2543_s14, %s2543_s14 }
  0x3e   :  { %p2290_p13 = scmp.ne.s32.totalorder %s2543_s14, %s2289_s18  ;;  %p2295_p1 = scmp.lt.s32.totalorder %s2289_s18, %s2289_s18 }
  0x40   :  { %p2296_p2 = por %p2295_p1, %p2294_p0 }
  0x42   :  { %p2297_p3 = pnand %p2296_p2, %p2290_p13 }
  0x44   :  { %2300 = shalt.err (!%p2297_p3)
}
  0x45   :  { %35 = dma.hbm_to_vmem [thread:$0]  %s2830_s0, 256, %s2543_s14, [#allocation4], %s2425_s15, %s2425_s15, %s2426_s16  }
  0x46   :  { %s2429_s19 = smov [#allocation8]   ;;  %s2430_s21 = smov [#allocation11]  }
  0x47   :  { %s53_s20 = sshll.u32 %s2429_s19, 4  ;;  %s79_s23 = sshll.u32 %s2430_s21, 4  ;;  %s54_s20 = int_to_ptr.vmem [resolvable:$true] %s53_s20  ;;  %s2580_s23 = int_to_ptr.vmem [resolvable:$true] %s79_s23 }
  0x48   :  { %s2301_s24 = scalar_lea.hbm %s2832_s2, 256 }
  0x49   :  { %p2302_p4 = scmp.ne.s32.totalorder %s2832_s2, %s2301_s24  ;;  %p2305_p5 = scmp.lt.u32.totalorder %s2301_s24, %s2832_s2 }
  0x4b   :  { %p2307_p6 = pnand %p2305_p5, %p2302_p4 }
  0x4d   :  { %2310 = shalt.err (!%p2307_p6)
}
  0x4e   :  { %s2311_s0 = scalar_lea.vmem %s54_s20, 256  ;;  %p2316_p8 = scmp.lt.s32.totalorder %s54_s20, %s54_s20 }
  0x4f   :  { %p2312_p7 = scmp.ne.s32.totalorder %s54_s20, %s2311_s0  ;;  %p2317_p9 = scmp.lt.s32.totalorder %s2311_s0, %s2311_s0 }
  0x51   :  { %p2318_p10 = por %p2317_p9, %p2316_p8 }
  0x53   :  { %p2319_p11 = pnand %p2318_p10, %p2312_p7 }
  0x55   :  { %2322 = shalt.err (!%p2319_p11)
}
  0x56   :  { %59 = dma.hbm_to_vmem [thread:$0]  %s2832_s2, 256, %s54_s20, [#allocation7], %s2425_s15, %s2425_s15, %s2426_s16  }
  0x57   :  { %s2323_s17 = scalar_lea.hbm %s2835_s5, 512 }
  0x58   :  { %p2324_p12 = scmp.ne.s32.totalorder %s2835_s5, %s2323_s17  ;;  %p2327_p13 = scmp.lt.u32.totalorder %s2323_s17, %s2835_s5 }
  0x5a   :  { %p2329_p0 = pnand %p2327_p13, %p2324_p12 }
  0x5c   :  { %2332 = shalt.err (!%p2329_p0)
}
  0x5d   :  { %s2333_s21 = scalar_lea.vmem %s2580_s23, 512  ;;  %p2338_p2 = scmp.lt.s32.totalorder %s2580_s23, %s2580_s23 }
  0x5e   :  { %p2334_p1 = scmp.ne.s32.totalorder %s2580_s23, %s2333_s21  ;;  %p2339_p3 = scmp.lt.s32.totalorder %s2333_s21, %s2333_s21 }
  0x60   :  { %p2340_p4 = por %p2339_p3, %p2338_p2 }
  0x62   :  { %p2341_p5 = pnand %p2340_p4, %p2334_p1 }
  0x64   :  { %2344 = shalt.err (!%p2341_p5)
}
  0x65   :  { %85 = dma.hbm_to_vmem [thread:$0]  %s2835_s5, 512, %s2580_s23, [#allocation10], %s2425_s15, %s2425_s15, %s2426_s16  }
  0x66   :  { %s2431_s25 = smov [#allocation14]   ;;  %s2345_s27 = scalar_lea.hbm %s2838_s8, 16 }
  0x67   :  { %s106_s3 = sshll.u32 %s2431_s25, 4  ;;  %p2346_p6 = scmp.ne.s32.totalorder %s2838_s8, %s2345_s27  ;;  %s107_s3 = int_to_ptr.vmem [resolvable:$true] %s106_s3 }
  0x68   :  { %p2349_p7 = scmp.lt.u32.totalorder %s2345_s27, %s2838_s8 }
  0x6a   :  { %p2351_p8 = pnand %p2349_p7, %p2346_p6 }
  0x6c   :  { %2354 = shalt.err (!%p2351_p8)
}
  0x6d   :  { %s2355_s22 = scalar_lea.vmem %s107_s3, 16  ;;  %s2359_s5 = scalar_lea.vmem %s107_s3, 32 }
  0x6e   :  { %p2356_p9 = scmp.ne.s32.totalorder %s107_s3, %s2355_s22  ;;  %p2360_p10 = scmp.lt.s32.totalorder %s107_s3, %s107_s3 }
  0x6f   :  { %p2361_p11 = scmp.lt.s32.totalorder %s2359_s5, %s2355_s22 }
  0x71   :  { %p2362_p12 = por %p2361_p11, %p2360_p10 }
  0x73   :  { %p2363_p13 = pnand %p2362_p12, %p2356_p9 }
  0x75   :  { %2366 = shalt.err (!%p2363_p13)
}
  0x76   :  { %109 = dma.hbm_to_vmem [thread:$0]  %s2838_s8, 16, %s107_s3, [#allocation13]  }
  0x77   :  { %2411 = dma.done.wait [#allocation4], 256  }
  0x78   :  { %2412 = vsyncadd [#allocation4], 4294967040 }
  0x79   :  { %2413 = dma.done.wait [#allocation7], 512  }
  0x7a   :  { %2414 = vsyncadd [#allocation7], 4294966784 }
  0x7b   :  { %2415 = dma.done.wait [#allocation10], 1024  }
  0x7c   :  { %2416 = vsyncadd [#allocation10], 4294966272 }
  0x7d   :  { %2417 = dma.done.wait [#allocation13], 528  }
  0x7e   :  { %2418 = vsyncadd [#allocation13], 4294966768  ;;  %v137_v0 = vld [vmem:[#allocation9] sm:$0xff]  ;;  %v138_v1 = vld [vmem:[#allocation9 + $0x8] sm:$0xff]  ;;  %vm148_vm0 = vcmask 261120   ;;  %v2432_v16 = vmov 0.0  }
  0x7f   :  { %v234_v2 = vld [vmem:[#allocation11] sm:$0xff]  ;;  %v2131_v3 = vpack.c.bf16 %v138_v1, %v137_v0  ;;  %v235_v4 = vld [vmem:[#allocation11 + $0x8] sm:$0xff]  ;;  %v139_v5 = vld [vmem:[#allocation9 + $0x10] sm:$0xff]  ;;  %vm2433_vm1 = vmmov 0   ;;  %vm420_vm2 = vcmask 64512   ;;  %s2434_s7 = smov 120  }
  0x80   :  { %v140_v6 = vld [vmem:[#allocation9 + $0x18] sm:$0xff]  ;;  %v2139_v7 = vpack.c.bf16 %v235_v4, %v234_v2  ;;  %v236_v9 = vld [vmem:[#allocation11 + $0x10] sm:$0xff]  ;;  %v232_v13 = vld [vmem:[#allocation6] sm:$0xff]  ;;  %s2437_s30 = smov 16   ;;  %s2438_s19 = smov 24   ;;  %vm755_vm3 = vcmask 130112  }
  0x81   :  { %v2135_v8 = vpack.c.bf16 %v140_v6, %v139_v5  ;;  %v237_v10 = vld [vmem:[#allocation11 + $0x18] sm:$0xff]  ;;  %v135_v11 = vld [vmem:[#allocation3] sm:$0xff]  ;;  %2132 = vmatprep.subr.bf16.mxu0 %v2131_v3  ;;  %2026 = vmatprep.mubr.msk.f32.mxu1 %vm148_vm0, %v232_v13  ;;  %v233_v15 = vld [vmem:[#allocation6 + $0x8] sm:$0xff]  ;;  %vm928_vm4 = vcmask 195712   ;;  %vm1101_vm5 = vcmask 261312  }
  0x82   :  { %v2143_v12 = vpack.c.bf16 %v237_v10, %v236_v9  ;;  %2015 = vmatprep.mubr.msk.f32.mxu0 %vm148_vm0, %v135_v11  ;;  %2140 = vmatprep.subr.bf16.mxu1 %v2139_v7  ;;  %v136_v14 = vld [vmem:[#allocation3 + $0x8] sm:$0xff]  ;;  %v1915_v17 = vld [vmem:[%s2834_s4] ss:$0 sm:$0xff]  ;;  %s2435_s4 = smov 112   ;;  %v329_v30 = vld [vmem:[#allocation12 + $0x8] sm:$0xff] }
  0x83   :  { %2134 = vmatpush3.bf16.msra.mxu0 %v2131_v3  ;;  %2142 = vmatpush3.bf16.msra.mxu1 %v2139_v7  ;;  %v1918_v19 = vld [vmem:[%s2836_s6] ss:$0 sm:$0xff]  ;;  %s2436_s6 = smov 104   ;;  %v330_v31 = vld [vmem:[#allocation12 + $0x10] sm:$0xff]  ;;  %v331_v33 = vld [vmem:[#allocation12 + $0x18] sm:$0xff] }
  0x84   :  { %2136 = vmatprep.subr.bf16.mxu0 %v2135_v8  ;;  %2144 = vmatprep.subr.bf16.mxu1 %v2143_v12  ;;  %v328_v29 = vld [vmem:[#allocation12] sm:$0xff]  ;;  %v326_v34 = vld [vmem:[#allocation8] sm:$0xff]  ;;  %v2151_v35 = vpack.c.bf16 %v331_v33, %v330_v31  ;;  %v327_v36 = vld [vmem:[#allocation8 + $0x8] sm:$0xff] }
  0x85   :  { %v2147_v32 = vpack.c.bf16 %v329_v30, %v328_v29  ;;  %v1921_v46 = vld [vmem:[#allocation14] ss:$0 sm:$0xff] }
  0x87   :  { %2138 = vmatpush3.bf16.msra.mxu0 %v2135_v8  ;;  %2146 = vmatpush3.bf16.msra.mxu1 %v2143_v12 }
  0x88   :  { %2040 = vmatprep.subr.mxu1 %v2432_v16  ;;  %2148 = vmatprep.subr.bf16.mxu0 %v2147_v32 }
  0x8a   :  { %2016 = vmatmul.mubr.msk.f32.vlgmr.msra.gmra.mrb[0].mxu0 %vm148_vm0, %v136_v14  ;;  %2027 = vmatmul.mubr.msk.f32.vlgmr.msra.gmra.mrb[0].mxu1 %vm148_vm0, %v233_v15 }
  0x8b   :  { %2042 = vmatprep.mubr.msk.f32.mxu1 %vm2433_vm1, %v2432_v16  ;;  %2037 = vmatprep.mubr.msk.f32.mxu0 %vm148_vm0, %v326_v34 }
  0x8c   :  { %2150 = vmatpush3.bf16.msra.mxu0 %v2147_v32 }
  0x8d   :  { %2152 = vmatprep.subr.bf16.mxu0 %v2151_v35 }
  0x90   :  { %2154 = vmatpush3.bf16.msra.mxu0 %v2151_v35 }
  0x91   :  { %2060 = vmatprep.subr.mxu0 %v2432_v16 }
  0x93   :  { %2038 = vmatmul.mubr.msk.f32.vlgmr.msra.gmra.mrb[2].mxu0 %vm148_vm0, %v327_v36 }
  0x94   :  { %2062 = vmatprep.mubr.msk.f32.mxu0 %vm2433_vm1, %v2432_v16 }
 0x15d   :  { %v2017_v18 = vpop.f32.mrb[0].mxu0  ;;  %v2028_v20 = vpop.f32.mrb[0].mxu1 }
 0x15e   :  { %v221_v21 = vpop.f32.mrb[1].mxu0  ;;  %v317_v23 = vpop.f32.mrb[1].mxu1  ;;  %v227_v26 = vadd.f32 %v2017_v18, %v1915_v17  ;;  %v323_v27 = vadd.f32 %v2028_v20, %v1918_v19 }
 0x15f   :  { %v222_v22 = vadd.f32 %v1915_v17, %v221_v21  ;;  %v318_v24 = vadd.f32 %v1918_v19, %v317_v23 }
 0x160   :  { %v2653_v28 = vmul.f32 0.35355338, %v227_v26 }
 0x161   :  { %v230_v25 = vmul.f32 0.35355338, %v222_v22  ;;  %585 = vrot.lane.b32.xlu1 %v318_v24, %s2434_s7  ;;  %2041 = vmatpush3.xpose.msk.msra.mxu1 %vm420_vm2, %v318_v24 }
 0x162   :  { %2045 = vmatprep.subr.mxu1 %v2432_v16 }
 0x164   :  { %2043 = vmatmul.mubr.msk.f32.vlgmr.msra.gmra.mrb[2].mxu1 %vm420_vm2, %v230_v25 }
 0x165   :  { %583 = vrot.lane.b32.xlu1 %v230_v25, %s2434_s7  ;;  %2047 = vmatprep.mubr.msk.f32.mxu1 %vm2433_vm1, %v2432_v16 }
 0x166   :  { %v2039_v45 = vpop.f32.mrb[2].mxu0 }
 0x167   :  { %v411_v47 = vpop.f32.mrb[3].mxu0  ;;  %v2673_v49 = vadd.f32 %v2039_v45, %v1921_v46 }
 0x168   :  { %v2666_v48 = vadd.f32 %v1921_v46, %v411_v47 }
 0x169   :  { %757 = vrot.lane.b32.xlu1 %v230_v25, %s2435_s4 }
 0x16a   :  { %2046 = vmatpush3.msra.mxu1 %v2666_v48 }
 0x16b   :  { %2050 = vmatprep.subr.mxu1 %v2432_v16 }
 0x16d   :  { %932 = vrot.lane.b32.xlu1 %v318_v24, %s2436_s6 }
 0x171   :  { %930 = vrot.lane.b32.xlu1 %v230_v25, %s2436_s6 }
 0x175   :  { %1268 = vrot.lane.b32.xlu1 %v323_v27, %s2434_s7 }
 0x179   :  { %1266 = vrot.lane.b32.xlu1 %v2653_v28, %s2434_s7 }
 0x17d   :  { %1441 = vrot.lane.b32.xlu1 %v323_v27, %s2435_s4 }
 0x181   :  { %1613 = vrot.lane.b32.xlu1 %v323_v27, %s2436_s6 }
 0x1d3   :  { %v586_v50 = vpop.permute.xlu1 %585 }
 0x1d7   :  { %v584_v51 = vpop.permute.xlu1 %583 }
 0x1db   :  { %v758_v52 = vpop.permute.xlu1 %757 }
 0x1df   :  { %v933_v53 = vpop.permute.xlu1 %932 }
 0x1e3   :  { %v931_v54 = vpop.permute.xlu1 %930 }
 0x1e7   :  { %v1269_v57 = vpop.permute.xlu1 %1268 }
 0x1eb   :  { %v1267_v59 = vpop.permute.xlu1 %1266 }
 0x1ef   :  { %v1442_v61 = vpop.permute.xlu1 %1441 }
 0x1f3   :  { %v1614_v63 = vpop.permute.xlu1 %1613 }
 0x237   :  { %v493_v37 = vpop.f32.mrb[2].mxu1 }
 0x238   :  { %v2044_v38 = vpop.f32.mrb[3].mxu1  ;;  %v497_v39 = vsel %vm420_vm2, %v493_v37, -inf }
 0x239   :  { %498 = vmax.xlane.f32.xlu0 %v497_v39 }
 0x2c6   :  { %v499_v40 = vpop.xlane.xlu0 %498 }
 0x2c7   :  { %v500_v41 = vsub.f32 %v493_v37, %v499_v40 }
 0x2c9   :  { %v501_v42 = vmul.f32 1.442695, %v500_v41 }
 0x2cb   :  { %2181 = vpow2.f32 %v501_v42 }
 0x2d5   :  { %v2182_v43 = vpop.eup %2181 }
 0x2d6   :  { %v503_v44 = vsel %vm420_vm2, %v2182_v43, 0.0 }
 0x2d7   :  { %504 = vadd.xlane.f32.xlu0 %v503_v44 }
 0x2ed   :  { %759 = vrot.lane.b32.xlu0 %v318_v24, %s2435_s4 }
 0x2f1   :  { %1439 = vrot.lane.b32.xlu0 %v2653_v28, %s2435_s4 }
 0x2f5   :  { %1611 = vrot.lane.b32.xlu0 %v2653_v28, %s2436_s6 }
 0x364   :  { %v505_v55 = vpop.xlane.xlu0 %504 }
 0x365   :  { %2183 = vrcp.f32 %v505_v55 }
 0x368   :  { %v760_v56 = vpop.permute.xlu0 %759 }
 0x369   :  { %2061 = vmatpush3.xpose.msk.msra.mxu0 %vm420_vm2, %v760_v56 }
 0x36a   :  { %2070 = vmatprep.subr.mxu0 %v2432_v16 }
 0x36c   :  { %2063 = vmatmul.mubr.msk.f32.vlgmr.msra.gmra.mrb[4].mxu0 %vm420_vm2, %v758_v52  ;;  %v1440_v62 = vpop.permute.xlu0 %1439 }
 0x36d   :  { %2071 = vmatpush3.xpose.msk.msra.mxu0 %vm420_vm2, %v933_v53  ;;  %2072 = vmatprep.mubr.msk.f32.mxu0 %vm2433_vm1, %v2432_v16 }
 0x36e   :  { %2080 = vmatprep.subr.mxu0 %v2432_v16 }
 0x36f   :  { %v2184_v58 = vpop.eup %2183 }
 0x370   :  { %v507_v60 = vmul.f32 %v2184_v58, %v2182_v43  ;;  %2073 = vmatmul.mubr.msk.f32.vlgmr.msra.gmra.mrb[6].mxu0 %vm420_vm2, %v931_v54  ;;  %v1612_v0 = vpop.permute.xlu0 %1611 }
 0x371   :  { %2081 = vmatpush3.xpose.msk.msra.mxu0 %vm420_vm2, %v323_v27  ;;  %2082 = vmatprep.mubr.msk.f32.mxu0 %vm2433_vm1, %v2432_v16 }
 0x372   :  { %508 = vst.msk [vmem:[#allocation16] sm:$0xff] %vm420_vm2, %v507_v60  ;;  %2048 = vmatmul.mubr.msk.f32.vlgmr.msra.gmra.mrb[4].mxu1 %vm420_vm2, %v507_v60  ;;  %2090 = vmatprep.subr.mxu0 %v2432_v16 }
 0x373   :  { %2051 = vmatpush3.xpose.msk.msra.mxu1 %vm420_vm2, %v586_v50  ;;  %2052 = vmatprep.mubr.msk.f32.mxu1 %vm2433_vm1, %v2432_v16 }
 0x374   :  { %2083 = vmatmul.mubr.msk.f32.vlgmr.msra.gmra.mrb[8].mxu0 %vm420_vm2, %v2653_v28  ;;  %2055 = vmatprep.subr.mxu1 %v2432_v16 }
 0x375   :  { %2091 = vmatpush3.xpose.msk.msra.mxu0 %vm420_vm2, %v1269_v57  ;;  %2092 = vmatprep.mubr.msk.f32.mxu0 %vm2433_vm1, %v2432_v16 }
 0x376   :  { %2053 = vmatmul.mubr.msk.f32.vlgmr.msra.gmra.mrb[6].mxu1 %vm420_vm2, %v584_v51  ;;  %2100 = vmatprep.subr.mxu0 %v2432_v16 }
 0x377   :  { %2057 = vmatprep.mubr.msk.f32.mxu1 %vm2433_vm1, %v2432_v16 }
 0x378   :  { %2093 = vmatmul.mubr.msk.f32.vlgmr.msra.gmra.mrb[10].mxu0 %vm420_vm2, %v1267_v59 }
 0x379   :  { %2101 = vmatpush3.xpose.msk.msra.mxu0 %vm420_vm2, %v1442_v61  ;;  %2102 = vmatprep.mubr.msk.f32.mxu0 %vm2433_vm1, %v2432_v16 }
 0x37a   :  { %2110 = vmatprep.subr.mxu0 %v2432_v16 }
 0x37c   :  { %2103 = vmatmul.mubr.msk.f32.vlgmr.msra.gmra.mrb[12].mxu0 %vm420_vm2, %v1440_v62 }
 0x37d   :  { %2111 = vmatpush3.xpose.msk.msra.mxu0 %vm420_vm2, %v1614_v63  ;;  %2112 = vmatprep.mubr.msk.f32.mxu0 %vm2433_vm1, %v2432_v16 }
 0x380   :  { %2113 = vmatmul.mubr.msk.f32.vlgmr.msra.gmra.mrb[14].mxu0 %vm420_vm2, %v1612_v0 }
 0x43f   :  { %v831_v1 = vpop.f32.mrb[4].mxu0 }
 0x440   :  { %v2064_v2 = vpop.f32.mrb[5].mxu0  ;;  %v835_v3 = vsel %vm420_vm2, %v831_v1, -inf }
 0x441   :  { %836 = vmax.xlane.f32.xlu0 %v835_v3 }
 0x443   :  { %v1004_v4 = vpop.f32.mrb[6].mxu0 }
 0x444   :  { %v2074_v5 = vpop.f32.mrb[7].mxu0  ;;  %v1008_v6 = vsel %vm420_vm2, %v1004_v4, -inf }
 0x445   :  { %1009 = vmax.xlane.f32.xlu0 %v1008_v6  ;;  %v578_v7 = vpop.f32.mrb[4].mxu1 }
 0x446   :  { %582 = vst.msk [vmem:[#allocation2] sm:$0xff] %vm420_vm2, %v578_v7  ;;  %v2049_v8 = vpop.f32.mrb[5].mxu1 }
 0x447   :  { %v1175_v9 = vpop.f32.mrb[8].mxu0 }
 0x448   :  { %v2084_v10 = vpop.f32.mrb[9].mxu0  ;;  %v1179_v18 = vsel %vm420_vm2, %v1175_v9, -inf }
 0x449   :  { %v2717_v11 = vpop.f32.mrb[6].mxu1 }
 0x44a   :  { %v2054_v12 = vpop.f32.mrb[7].mxu1  ;;  %v661_v13 = vsel %vm420_vm2, %v2717_v11, -inf }
 0x44b   :  { %v1340_v14 = vpop.f32.mrb[10].mxu0  ;;  %662 = vmax.xlane.f32.xlu1 %v661_v13 }
 0x44c   :  { %v2094_v15 = vpop.f32.mrb[11].mxu0  ;;  %v1344_v17 = vsel %vm420_vm2, %v1340_v14, -inf }
 0x44d   :  { %1345 = vmax.xlane.f32.xlu0 %v1344_v17 }
 0x44f   :  { %v1513_v19 = vpop.f32.mrb[12].mxu0  ;;  %1180 = vmax.xlane.f32.xlu1 %v1179_v18 }
 0x450   :  { %v2104_v20 = vpop.f32.mrb[13].mxu0  ;;  %v1517_v21 = vsel %vm420_vm2, %v1513_v19, -inf }
 0x453   :  { %v1685_v22 = vpop.f32.mrb[14].mxu0  ;;  %1518 = vmax.xlane.f32.xlu1 %v1517_v21 }
 0x454   :  { %v2114_v23 = vpop.f32.mrb[15].mxu0  ;;  %v1689_v24 = vsel %vm420_vm2, %v1685_v22, -inf }
 0x455   :  { %1690 = vmax.xlane.f32.xlu0 %v1689_v24 }
 0x4ce   :  { %v837_v25 = vpop.xlane.xlu0 %836 }
 0x4cf   :  { %v838_v26 = vsub.f32 %v831_v1, %v837_v25 }
 0x4d1   :  { %v839_v27 = vmul.f32 1.442695, %v838_v26 }
 0x4d2   :  { %v1010_v28 = vpop.xlane.xlu0 %1009 }
 0x4d3   :  { %2185 = vpow2.f32 %v839_v27  ;;  %v1011_v29 = vsub.f32 %v1004_v4, %v1010_v28 }
 0x4d5   :  { %v1012_v30 = vmul.f32 1.442695, %v1011_v29 }
 0x4d7   :  { %2187 = vpow2.f32 %v1012_v30  ;;  %v1785_v30 = vld [vmem:[%s2839_s9] sm:$0xff] }
 0x4d8   :  { %v663_v31 = vpop.xlane.xlu1 %662 }
 0x4d9   :  { %v664_v58 = vsub.f32 %v2717_v11, %v663_v31 }
 0x4da   :  { %v1346_v32 = vpop.xlane.xlu0 %1345 }
 0x4db   :  { %v1347_v33 = vsub.f32 %v1340_v14, %v1346_v32  ;;  %v665_v59 = vmul.f32 1.442695, %v664_v58 }
 0x4dc   :  { %v1181_v34 = vpop.xlane.xlu1 %1180 }
 0x4dd   :  { %v2186_v35 = vpop.eup %2185  ;;  %v1348_v36 = vmul.f32 1.442695, %v1347_v33  ;;  %v1182_v37 = vsub.f32 %v1175_v9, %v1181_v34  ;;  %v1787_v33 = vld [vmem:[%s2839_s9 + $0x10] sm:$0xff]  ;;  %v1788_v34 = vld [vmem:[%s2839_s9 + $0x18] sm:$0xff] }
 0x4de   :  { %v841_v38 = vsel %vm420_vm2, %v2186_v35, 0.0 }
 0x4df   :  { %2189 = vpow2.f32 %v1348_v36  ;;  %v1183_v39 = vmul.f32 1.442695, %v1182_v37  ;;  %842 = vadd.xlane.f32.xlu0 %v841_v38  ;;  %v2159_v36 = vpack.c.bf16 %v1788_v34, %v1787_v33 }
 0x4e0   :  { %v1519_v40 = vpop.xlane.xlu1 %1518 }
 0x4e1   :  { %v2188_v41 = vpop.eup %2187  ;;  %2191 = vpow2.f32 %v1183_v39  ;;  %v1520_v42 = vsub.f32 %v1513_v19, %v1519_v40 }
 0x4e2   :  { %v1691_v43 = vpop.xlane.xlu0 %1690  ;;  %v1014_v44 = vsel %vm420_vm2, %v2188_v41, 0.0 }
 0x4e3   :  { %v1521_v45 = vmul.f32 1.442695, %v1520_v42  ;;  %v1692_v46 = vsub.f32 %v1685_v22, %v1691_v43  ;;  %1015 = vadd.xlane.f32.xlu1 %v1014_v44 }
 0x4e5   :  { %2193 = vpow2.f32 %v1521_v45  ;;  %v1693_v47 = vmul.f32 1.442695, %v1692_v46 }
 0x4e7   :  { %2195 = vpow2.f32 %v1693_v47 }
 0x4e8   :  { %2197 = vpow2.f32 %v665_v59 }
 0x4e9   :  { %v2190_v50 = vpop.eup %2189 }
 0x4ea   :  { %v1350_v51 = vsel %vm420_vm2, %v2190_v50, 0.0 }
 0x4eb   :  { %v2192_v52 = vpop.eup %2191  ;;  %1351 = vadd.xlane.f32.xlu1 %v1350_v51 }
 0x4ec   :  { %v1185_v53 = vsel %vm420_vm2, %v2192_v52, 0.0 }
 0x4ed   :  { %1186 = vadd.xlane.f32.xlu0 %v1185_v53 }
 0x4ef   :  { %v2194_v54 = vpop.eup %2193 }
 0x4f0   :  { %v1523_v55 = vsel %vm420_vm2, %v2194_v54, 0.0 }
 0x4f1   :  { %v2196_v56 = vpop.eup %2195  ;;  %1524 = vadd.xlane.f32.xlu0 %v1523_v55 }
 0x4f2   :  { %v1695_v57 = vsel %vm420_vm2, %v2196_v56, 0.0  ;;  %v2198_v60 = vpop.eup %2197 }
 0x4f3   :  { %1696 = vadd.xlane.f32.xlu1 %v1695_v57  ;;  %v667_v61 = vsel %vm420_vm2, %v2198_v60, 0.0 }
 0x504   :  { %848 = vrot.lane.b32.xlu1 %v2666_v48, %s2435_s4 }
 0x507   :  { %675 = vrot.lane.b32.xlu0 %v2666_v48, %s2434_s7 }
 0x50b   :  { %1358 = vrot.lane.b32.xlu0 %v2673_v49, %s2434_s7 }
 0x50f   :  { %1702 = vrot.lane.b32.xlu0 %v2673_v49, %s2436_s6 }
 0x528   :  { %668 = vadd.xlane.f32.xlu1 %v667_v61 }
 0x539   :  { %1021 = vrot.lane.b32.xlu1 %v2666_v48, %s2436_s6 }
 0x53d   :  { %1530 = vrot.lane.b32.xlu1 %v2673_v49, %s2435_s4 }
 0x56c   :  { %v843_v62 = vpop.xlane.xlu0 %842 }
 0x56d   :  { %2199 = vrcp.f32 %v843_v62 }
 0x570   :  { %v1016_v63 = vpop.xlane.xlu1 %1015 }
 0x571   :  { %2201 = vrcp.f32 %v1016_v63 }
 0x577   :  { %v2200_v0 = vpop.eup %2199 }
 0x578   :  { %v845_v1 = vmul.f32 %v2200_v0, %v2186_v35  ;;  %v1352_v2 = vpop.xlane.xlu1 %1351 }
 0x579   :  { %2203 = vrcp.f32 %v1352_v2 }
 0x57a   :  { %847 = vst.msk [vmem:[#allocation16 + $0x10] sm:$0xff] %vm420_vm2, %v845_v1  ;;  %v1187_v3 = vpop.xlane.xlu0 %1186 }
 0x57b   :  { %v2202_v4 = vpop.eup %2201  ;;  %2205 = vrcp.f32 %v1187_v3 }
 0x57c   :  { %v1018_v5 = vmul.f32 %v2202_v4, %v2188_v41 }
 0x57e   :  { %1020 = vst.msk [vmem:[#allocation16 + $0x18] sm:$0xff] %vm420_vm2, %v1018_v5  ;;  %v1525_v48 = vpop.xlane.xlu0 %1524 }
 0x57f   :  { %2207 = vrcp.f32 %v1525_v48 }
 0x580   :  { %v1697_v6 = vpop.xlane.xlu1 %1696 }
 0x581   :  { %2209 = vrcp.f32 %v1697_v6 }
 0x582   :  { %v676_v7 = vpop.permute.xlu0 %675 }
 0x583   :  { %v2204_v8 = vpop.eup %2203  ;;  %2056 = vmatpush3.msra.mxu1 %v676_v7 }
 0x584   :  { %v1354_v9 = vmul.f32 %v2204_v8, %v2190_v50  ;;  %2065 = vmatprep.subr.mxu1 %v2432_v16  ;;  %v849_v17 = vpop.permute.xlu1 %848 }
 0x585   :  { %v2206_v10 = vpop.eup %2205 }
 0x586   :  { %1356 = vst.msk [vmem:[#allocation16 + $0x28] sm:$0xff] %vm420_vm2, %v1354_v9  ;;  %v1189_v11 = vmul.f32 %v2206_v10, %v2192_v52  ;;  %v1359_v22 = vpop.permute.xlu0 %1358 }
 0x588   :  { %1191 = vst.msk [vmem:[#allocation16 + $0x20] sm:$0xff] %vm420_vm2, %v1189_v11 }
 0x589   :  { %v2208_v12 = vpop.eup %2207 }
 0x58a   :  { %v1527_v13 = vmul.f32 %v2208_v12, %v2194_v54 }
 0x58b   :  { %v2210_v14 = vpop.eup %2209 }
 0x58c   :  { %1529 = vst.msk [vmem:[#allocation16 + $0x30] sm:$0xff] %vm420_vm2, %v1527_v13  ;;  %v1699_v15 = vmul.f32 %v2210_v14, %v2196_v56 }
 0x58e   :  { %1701 = vst.msk [vmem:[#allocation16 + $0x38] sm:$0xff] %vm420_vm2, %v1699_v15 }
 0x5b5   :  { %v669_v18 = vpop.xlane.xlu1 %668 }
 0x5b6   :  { %2211 = vrcp.f32 %v669_v18 }
 0x5b9   :  { %v1022_v21 = vpop.permute.xlu1 %1021 }
 0x5bd   :  { %v1531_v23 = vpop.permute.xlu1 %1530 }
 0x5c0   :  { %v2212_v19 = vpop.eup %2211 }
 0x5c1   :  { %v671_v20 = vmul.f32 %v2212_v19, %v2198_v60 }
 0x5c3   :  { %673 = vst.msk [vmem:[#allocation16 + $0x8] sm:$0xff] %vm420_vm2, %v671_v20  ;;  %2058 = vmatmul.mubr.msk.f32.vlgmr.msra.gmra.mrb[8].mxu1 %vm420_vm2, %v671_v20 }
 0x5c4   :  { %2066 = vmatpush3.msra.mxu1 %v849_v17  ;;  %2067 = vmatprep.mubr.msk.f32.mxu1 %vm2433_vm1, %v2432_v16 }
 0x5c5   :  { %2075 = vmatprep.subr.mxu1 %v2432_v16 }
 0x5c7   :  { %2068 = vmatmul.mubr.msk.f32.vlgmr.msra.gmra.mrb[10].mxu1 %vm420_vm2, %v845_v1 }
 0x5c8   :  { %2076 = vmatpush3.msra.mxu1 %v1022_v21  ;;  %2077 = vmatprep.mubr.msk.f32.mxu1 %vm2433_vm1, %v2432_v16 }
 0x5c9   :  { %2085 = vmatprep.subr.mxu1 %v2432_v16 }
 0x5cb   :  { %2078 = vmatmul.mubr.msk.f32.vlgmr.msra.gmra.mrb[12].mxu1 %vm420_vm2, %v1018_v5 }
 0x5cc   :  { %2086 = vmatpush3.msra.mxu1 %v2673_v49  ;;  %2087 = vmatprep.mubr.msk.f32.mxu1 %vm2433_vm1, %v2432_v16  ;;  %v1703_v49 = vpop.permute.xlu0 %1702 }
 0x5cd   :  { %2095 = vmatprep.subr.mxu1 %v2432_v16 }
 0x5cf   :  { %2088 = vmatmul.mubr.msk.f32.vlgmr.msra.gmra.mrb[14].mxu1 %vm420_vm2, %v1189_v11 }
 0x5d0   :  { %2096 = vmatpush3.msra.mxu1 %v1359_v22  ;;  %2097 = vmatprep.mubr.msk.f32.mxu1 %vm2433_vm1, %v2432_v16 }
 0x5d1   :  { %2105 = vmatprep.subr.mxu1 %v2432_v16 }
 0x5d3   :  { %2098 = vmatmul.mubr.msk.f32.vlgmr.msra.gmra.mrb[16].mxu1 %vm420_vm2, %v1354_v9 }
 0x5d4   :  { %2106 = vmatpush3.msra.mxu1 %v1531_v23  ;;  %2107 = vmatprep.mubr.msk.f32.mxu1 %vm2433_vm1, %v2432_v16 }
 0x5d5   :  { %2115 = vmatprep.subr.mxu1 %v2432_v16 }
 0x5d7   :  { %2108 = vmatmul.mubr.msk.f32.vlgmr.msra.gmra.mrb[18].mxu1 %vm420_vm2, %v1527_v13 }
 0x5d8   :  { %2116 = vmatpush3.msra.mxu1 %v1703_v49  ;;  %2117 = vmatprep.mubr.msk.f32.mxu1 %vm2433_vm1, %v2432_v16  ;;  %v1786_v16 = vld [vmem:[%s2839_s9 + $0x8] sm:$0xff]  ;;  %s2439_s9 = smov [#allocation16]  }
 0x5d9   :  { %v2155_v31 = vpack.c.bf16 %v1786_v16, %v1785_v30  ;;  %s1896_s28 = sshll.u32 %s2439_s9, 4  ;;  %s1897_s28 = int_to_ptr.vmem [resolvable:$true] %s1896_s28 }
 0x5da   :  { %s2367_s1 = scalar_lea.vmem %s1897_s28, 1024  ;;  %p2372_p1 = scmp.lt.s32.totalorder %s1897_s28, %s1897_s28 }
 0x5db   :  { %2118 = vmatmul.mubr.msk.f32.vlgmr.msra.gmra.mrb[20].mxu1 %vm420_vm2, %v1699_v15  ;;  %2156 = vmatprep.subr.bf16.mxu0 %v2155_v31  ;;  %p2368_p0 = scmp.ne.s32.totalorder %s1897_s28, %s2367_s1  ;;  %p2373_p2 = scmp.lt.s32.totalorder %s2367_s1, %s2367_s1 }
 0x5dc   :  { %2158 = vmatpush3.bf16.msra.mxu0 %v2155_v31 }
 0x5dd   :  { %2160 = vmatprep.subr.bf16.mxu0 %v2159_v36  ;;  %p2374_p3 = por %p2373_p2, %p2372_p1 }
 0x5df   :  { %p2375_p4 = pnand %p2374_p3, %p2368_p0 }
 0x5e0   :  { %2162 = vmatpush3.bf16.msra.mxu0 %v2159_v36 }
 0x696   :  { %v747_v24 = vpop.f32.mrb[8].mxu1 }
 0x697   :  { %752 = vrot.lane.b32.xlu1 %v747_v24, %s2426_s16  ;;  %v2059_v25 = vpop.f32.mrb[9].mxu1 }
 0x69a   :  { %v920_v26 = vpop.f32.mrb[10].mxu1 }
 0x69b   :  { %925 = vrot.lane.b32.xlu0 %v920_v26, %s2437_s30  ;;  %v2069_v27 = vpop.f32.mrb[11].mxu1 }
 0x69e   :  { %v1093_v28 = vpop.f32.mrb[12].mxu1 }
 0x69f   :  { %1098 = vrot.lane.b32.xlu0 %v1093_v28, %s2438_s19  ;;  %v2079_v29 = vpop.f32.mrb[13].mxu1 }
 0x6a2   :  { %v1261_v32 = vpop.f32.mrb[14].mxu1 }
 0x6a3   :  { %1265 = vst.msk [vmem:[#allocation2 + $0x8] sm:$0xff] %vm420_vm2, %v1261_v32  ;;  %v2089_v35 = vpop.f32.mrb[15].mxu1 }
 0x6a6   :  { %v1430_v37 = vpop.f32.mrb[16].mxu1 }
 0x6a7   :  { %1435 = vrot.lane.b32.xlu1 %v1430_v37, %s2426_s16  ;;  %v2099_v38 = vpop.f32.mrb[17].mxu1 }
 0x6aa   :  { %v1602_v39 = vpop.f32.mrb[18].mxu1 }
 0x6ab   :  { %1607 = vrot.lane.b32.xlu1 %v1602_v39, %s2437_s30  ;;  %v2109_v40 = vpop.f32.mrb[19].mxu1 }
 0x6ae   :  { %v1774_v41 = vpop.f32.mrb[20].mxu1 }
 0x6af   :  { %1779 = vrot.lane.b32.xlu0 %v1774_v41, %s2438_s19  ;;  %v2119_v42 = vpop.f32.mrb[21].mxu1 }
 0x709   :  { %v753_v43 = vpop.permute.xlu1 %752 }
 0x70a   :  { %756 = vst.msk [vmem:[#allocation2] sm:$0xff] %vm755_vm3, %v753_v43 }
 0x70d   :  { %v926_v44 = vpop.permute.xlu0 %925 }
 0x70e   :  { %929 = vst.msk [vmem:[#allocation2] sm:$0xff] %vm928_vm4, %v926_v44 }
 0x711   :  { %v1099_v45 = vpop.permute.xlu0 %1098 }
 0x712   :  { %1102 = vst.msk [vmem:[#allocation2] sm:$0xff] %vm1101_vm5, %v1099_v45 }
 0x719   :  { %v1436_v46 = vpop.permute.xlu1 %1435  ;;  %v1783_v47 = vld [vmem:[#allocation2] sm:$0xff] }
 0x71a   :  { %1438 = vst.msk [vmem:[#allocation2 + $0x8] sm:$0xff] %vm755_vm3, %v1436_v46  ;;  %2128 = vmatprep.mubr.msk.f32.mxu0 %vm148_vm0, %v1783_v47 }
 0x71d   :  { %v1608_v50 = vpop.permute.xlu1 %1607 }
 0x71e   :  { %1610 = vst.msk [vmem:[#allocation2 + $0x8] sm:$0xff] %vm928_vm4, %v1608_v50 }
 0x721   :  { %v1780_v51 = vpop.permute.xlu0 %1779 }
 0x722   :  { %1782 = vst.msk [vmem:[#allocation2 + $0x8] sm:$0xff] %vm1101_vm5, %v1780_v51 }
 0x729   :  { %v1784_v52 = vld [vmem:[#allocation2 + $0x8] sm:$0xff] }
 0x72a   :  { %2129 = vmatmul.mubr.msk.f32.vlgmr.msra.gmra.mrb[16].mxu0 %vm148_vm0, %v1784_v52 }
 0x72b   :  { %2378 = shalt.err (!%p2375_p4)
}
 0x72c   :  { %s2379_s22 = scalar_lea.hbm %s2842_s12, 1024 }
 0x72d   :  { %p2380_p5 = scmp.ne.s32.totalorder %s2842_s12, %s2379_s22  ;;  %p2383_p6 = scmp.lt.u32.totalorder %s2379_s22, %s2842_s12 }
 0x72f   :  { %p2385_p7 = pnand %p2383_p6, %p2380_p5 }
 0x731   :  { %2388 = shalt.err (!%p2385_p7)
}
 0x732   :  { %1902 = dma.vmem_to_hbm [thread:$0]  %s1897_s28, 1024, %s2842_s12, [#allocation17], %s2425_s15, %s2425_s15, %s2426_s16  }
 0x733   :  { %v1948_v53 = vld [vmem:[%s2840_s10] ss:$0 sm:$0xff]  ;;  %s2440_s4 = smov [#allocation15]  }
 0x734   :  { %s1884_s6 = sshll.u32 %s2440_s4, 4  ;;  %s1885_s6 = int_to_ptr.vmem [resolvable:$true] %s1884_s6 }
 0x735   :  { %s2389_s30 = scalar_lea.vmem %s1885_s6, 256  ;;  %p2394_p9 = scmp.lt.s32.totalorder %s1885_s6, %s1885_s6 }
 0x736   :  { %p2390_p8 = scmp.ne.s32.totalorder %s1885_s6, %s2389_s30  ;;  %p2395_p10 = scmp.lt.s32.totalorder %s2389_s30, %s2389_s30 }
 0x738   :  { %p2396_p11 = por %p2395_p10, %p2394_p9 }
 0x73a   :  { %p2397_p12 = pnand %p2396_p11, %p2390_p8 }
 0x7fd   :  { %v2130_v54 = vpop.f32.mrb[16].mxu0 }
 0x7fe   :  { %v1874_v55 = vadd.f32 %v2130_v54, %v1948_v53  ;;  %v1868_v56 = vpop.f32.mrb[17].mxu0 }
 0x7ff   :  { %v1869_v57 = vadd.f32 %v1948_v53, %v1868_v56 }
 0x800   :  { %1878 = vst.msk [vmem:[#allocation15 + $0x8] sm:$0xff] %vm148_vm0, %v1874_v55 }
 0x801   :  { %1877 = vst.msk [vmem:[#allocation15] sm:$0xff] %vm148_vm0, %v1869_v57 }
 0x802   :  { %2400 = shalt.err (!%p2397_p12)
}
 0x803   :  { %s2401_s19 = scalar_lea.hbm %s2841_s11, 256 }
 0x804   :  { %p2402_p13 = scmp.ne.s32.totalorder %s2841_s11, %s2401_s19  ;;  %p2405_p0 = scmp.lt.u32.totalorder %s2401_s19, %s2841_s11 }
 0x806   :  { %p2407_p1 = pnand %p2405_p0, %p2402_p13 }
 0x808   :  { %2410 = shalt.err (!%p2407_p1)
}
 0x809   :  { %1890 = dma.vmem_to_hbm [thread:$0]  %s1885_s6, 256, %s2841_s11, [#allocation5], %s2425_s15, %s2425_s15, %s2426_s16  }
 0x80a   :  { %2419 = dma.done.wait [#allocation5], 256  }
 0x80b   :  { %2420 = vsyncadd [#allocation5], 4294967040 }
 0x80c   :  { %2421 = dma.done.wait [#allocation17], 1024  }
 0x80d   :  { %2422 = vsyncadd [#allocation17], 4294966272 }
 0x80e   :  { %1909 = vsyncpa [#allocation4], 1 }
 0x80f   :  { %1910 = vsyncpa [#allocation7], 1 }
 0x810   :  { %1911 = vsyncpa [#allocation10], 1 }
 0x811   :  { %1912 = vsyncpa [#allocation13], 1 }
 0x812   :  { %1913 = vsyncpa [#allocation5], 1 }
 0x813   :  { %1914 = vsyncpa [#allocation17], 1 }

</bundles_post_ra>
